<compile_context>
chip_gen: v7x
topology: tpu7x:2x2x1
jax: 0.10.0
libtpu: 0.0.40
codegen_flags: <defaults>
</compile_context>

<pallas_src>
import functools
import math

import jax
import jax.numpy as jnp
from jax.experimental import pallas as pl
from jax.experimental.pallas import tpu as pltpu


def _leaky(x, slope=0.1):
    return jnp.where(x >= 0, x, slope * x)


def _choose_block_b(B, target=8):
    """Largest divisor of B that is <= target, preferring >= 2 grid steps."""
    best = 1
    for cand in range(1, min(B, target) + 1):
        if B % cand != 0:
            continue
        if B // cand >= 2 or B == 1:
            best = cand
    return best


def mha_encoder_kernel(x_ref,
                       w1_ref, b1_ref,
                       wq_ref, bq_ref, wk_ref, bk_ref, wv_ref, bv_ref,
                       woth_ref, bo_ref, w2_ref, b2_ref,
                       out_ref, *, num_heads):
    bblk, n, d = x_ref.shape
    rows = bblk * n

    # Flatten the batch block so every projection feeds the MXU with bblk*N rows.
    x = x_ref[...].reshape(rows, d).astype(jnp.bfloat16)

    # ---- fc1: Conv1d(k=1) with BatchNorm folded in, LeakyReLU (Dropout p=0 -> identity)
    a = jnp.dot(x, w1_ref[...], preferred_element_type=jnp.float32) + b1_ref[...]
    a = _leaky(a)
    a16 = a.astype(jnp.bfloat16)

    # ---- Q / K / V projections (inner activation LeakyReLU)
    q = _leaky(jnp.dot(a16, wq_ref[...], preferred_element_type=jnp.float32) + bq_ref[...])
    k = _leaky(jnp.dot(a16, wk_ref[...], preferred_element_type=jnp.float32) + bk_ref[...])
    v = _leaky(jnp.dot(a16, wv_ref[...], preferred_element_type=jnp.float32) + bv_ref[...])

    c = q.shape[-1]
    dh = c // num_heads
    scale = 1.0 / math.sqrt(dh)

    q3 = q.astype(jnp.bfloat16).reshape(bblk, n, c)
    k3 = k.astype(jnp.bfloat16).reshape(bblk, n, c)
    v3 = v.astype(jnp.bfloat16).reshape(bblk, n, c)

    # ---- multi-head attention; per-head output projection accumulated directly
    #      (no lane-axis concatenate).
    att = jnp.broadcast_to(bo_ref[...].astype(jnp.float32), (rows, c))
    for h in range(num_heads):
        qh = q3[:, :, h * dh:(h + 1) * dh]
        kh = k3[:, :, h * dh:(h + 1) * dh]
        vh = v3[:, :, h * dh:(h + 1) * dh]
        # s[b, n, m] = <q_bn, k_bm> / sqrt(dh)
        s = jnp.einsum("bnd,bmd->bnm", qh, kh,
                       preferred_element_type=jnp.float32) * scale
        s = s - jnp.max(s, axis=-1, keepdims=True)
        p = jnp.exp(s)
        p = p * pl.reciprocal(jnp.sum(p, axis=-1, keepdims=True), approx=True)
        o = jnp.einsum("bnm,bmd->bnd", p.astype(jnp.bfloat16), vh,
                       preferred_element_type=jnp.float32)
        o2 = o.astype(jnp.bfloat16).reshape(rows, dh)
        att = att + jnp.dot(o2, woth_ref[h], preferred_element_type=jnp.float32)

    # ---- fc2: Conv1d(k=1) + LeakyReLU
    out = _leaky(jnp.dot(att.astype(jnp.bfloat16), w2_ref[...],
                         preferred_element_type=jnp.float32) + b2_ref[...])
    out_ref[...] = out.reshape(bblk, n, out.shape[-1]).astype(out_ref.dtype)


def multihead_attention_encoder(images, params, *, num_heads=4, block_b=8):
    B, N, D = images.shape
    c = params["wqt"].shape[0]
    latent = params["w2t"].shape[-1]
    assert c % num_heads == 0, f"channels {c} not divisible by num_heads {num_heads}"
    dh = c // num_heads

    bblk = _choose_block_b(B, block_b)
    grid_b = B // bblk

    f32, bf16 = jnp.float32, jnp.bfloat16

    # Fold eval-mode BatchNorm1d into the fc1 conv: w' = w*scale, b' = b*scale + shift.
    w1t_eff = (params["w1t"] * params["bn_scale"]).astype(bf16)
    b1_eff = (params["b1"] * params["bn_scale"] + params["bn_shift"]).astype(f32)

    # Pre-split the output projection per head: (H, dh, c) so att = sum_h o_h @ wot_h.
    woth = params["wot"].reshape(num_heads, dh, c).astype(bf16)

    weights = [
        w1t_eff, b1_eff,
        params["wqt"].astype(bf16), params["bq"].astype(f32),
        params["wkt"].astype(bf16), params["bk"].astype(f32),
        params["wvt"].astype(bf16), params["bv"].astype(f32),
        woth, params["bo"].astype(f32),
        params["w2t"].astype(bf16), params["b2"].astype(f32),
    ]

    kernel = functools.partial(mha_encoder_kernel, num_heads=num_heads)

    def const_map(ndim):
        return lambda g, _n=ndim: (0,) * _n

    in_specs = [pl.BlockSpec((bblk, N, D), lambda g: (g, 0, 0))]
    in_specs += [pl.BlockSpec(w.shape, const_map(w.ndim)) for w in weights]
    # NOTE: output last dim (latent) < 128 in the test config means masked stores; at real
    # LAVSE dims (latent=1024) the store is lane-dense.

    # Rough VMEM budget: double-buffered in/out blocks + weights + activation slack.
    block_bytes = bblk * N * (D + latent) * 4
    weight_bytes = sum(int(w.size) * w.dtype.itemsize for w in weights)
    act_bytes = bblk * N * (c * 8 + N) * 4
    est = 2 * block_bytes + 2 * weight_bytes + act_bytes
    vmem_limit = int(min(64 * 2 ** 20, max(32 * 2 ** 20, 2 * est)))

    return pl.pallas_call(
        kernel,
        out_shape=jax.ShapeDtypeStruct((B, N, latent), jnp.float32),
        grid=(grid_b,),
        in_specs=in_specs,
        out_specs=pl.BlockSpec((bblk, N, latent), lambda g: (g, 0, 0)),
        compiler_params=pltpu.CompilerParams(
            dimension_semantics=("parallel",),
            vmem_limit_bytes=vmem_limit,
        ),
    )(images, *weights)


def reference_forward(images, params, *, num_heads=4):
    """Pure-JAX f32 reference of the same forward pass (for correctness checking)."""
    a = jnp.einsum("bnd,dc->bnc", images, params["w1t"]) + params["b1"]
    a = a * params["bn_scale"] + params["bn_shift"]
    a = _leaky(a)
    q = _leaky(jnp.einsum("bnc,cd->bnd", a, params["wqt"]) + params["bq"])
    k = _leaky(jnp.einsum("bnc,cd->bnd", a, params["wkt"]) + params["bk"])
    v = _leaky(jnp.einsum("bnc,cd->bnd", a, params["wvt"]) + params["bv"])
    c = q.shape[-1]
    dh = c // num_heads
    scale = 1.0 / math.sqrt(dh)
    outs = []
    for h in range(num_heads):
        qh, kh, vh = (t[..., h * dh:(h + 1) * dh] for t in (q, k, v))
        s = jnp.einsum("bnd,bmd->bnm", qh, kh) * scale
        p = jax.nn.softmax(s, axis=-1)
        outs.append(jnp.einsum("bnm,bmd->bnd", p, vh))
    att = jnp.concatenate(outs, axis=-1)
    att = jnp.einsum("bnc,cd->bnd", att, params["wot"]) + params["bo"]
    return _leaky(jnp.einsum("bnc,cl->bnl", att, params["w2t"]) + params["b2"])


def make_params(key, img_dim, latent_size):
    c = img_dim // 4
    keys = jax.random.split(key, 16)
    normal = lambda k, shape, s=0.1: (s * jax.random.normal(k, shape)).astype(jnp.float32)

    # fc1 Conv1d weight (out=c, in=img_dim, 1) stored transposed as (img_dim, c)
    w1t = normal(keys[0], (img_dim, c))
    b1 = normal(keys[1], (1, c), 0.05)
    # BatchNorm1d (eval mode) folded into an affine scale/shift
    gamma = 1.0 + normal(keys[2], (1, c), 0.05)
    beta = normal(keys[3], (1, c), 0.05)
    running_mean = normal(keys[4], (1, c), 0.05)
    running_var = 1.0 + jnp.abs(normal(keys[5], (1, c), 0.05))
    eps = 1e-5
    bn_scale = gamma / jnp.sqrt(running_var + eps)
    bn_shift = beta - running_mean * bn_scale

    wqt = normal(keys[6], (c, c))
    bq = normal(keys[7], (1, c), 0.05)
    wkt = normal(keys[8], (c, c))
    bk = normal(keys[9], (1, c), 0.05)
    wvt = normal(keys[10], (c, c))
    bv = normal(keys[11], (1, c), 0.05)
    wot = normal(keys[12], (c, c))
    bo = normal(keys[13], (1, c), 0.05)

    # fc2 Conv1d weight (out=latent, in=c, 1) stored transposed as (c, latent)
    w2t = normal(keys[14], (c, latent_size))
    b2 = normal(keys[15], (1, latent_size), 0.05)

    return dict(w1t=w1t, b1=b1, bn_scale=bn_scale, bn_shift=bn_shift,
                wqt=wqt, bq=bq, wkt=wkt, bk=bk, wvt=wvt, bv=bv, wot=wot, bo=bo,
                w2t=w2t, b2=b2)


if __name__ == "__main__":
    B, N, IMG_DIM, LATENT = 8, 16, 64, 32

    key = jax.random.PRNGKey(0)
    k_img, k_par = jax.random.split(key)
    images = jax.random.normal(k_img, (B, N, IMG_DIM), dtype=jnp.float32)
    params = make_params(k_par, IMG_DIM, LATENT)

    out = jax.block_until_ready(multihead_attention_encoder(images, params, num_heads=4))
    ref = jax.block_until_ready(reference_forward(images, params, num_heads=4))

    assert out.shape == (B, N, LATENT), out.shape
    max_err = float(jnp.max(jnp.abs(out - ref)))
    # Kernel matmuls use bf16 inputs with f32 accumulation; reference is pure f32.
    assert jnp.allclose(out, ref, rtol=5e-2, atol=1e-2), max_err

    print("KERNEL_OK")
</pallas_src>

<mosaic_0001>
module attributes {stable_mosaic.version = 11 : i64} {
  func.func @mha_encoder_kernel(%arg0: i32, %arg1: memref<4x16x64xf32, #tpu.memory_space<vmem>>, %arg2: memref<64x16xbf16, #tpu.memory_space<vmem>>, %arg3: memref<1x16xf32, #tpu.memory_space<vmem>>, %arg4: memref<16x16xbf16, #tpu.memory_space<vmem>>, %arg5: memref<1x16xf32, #tpu.memory_space<vmem>>, %arg6: memref<16x16xbf16, #tpu.memory_space<vmem>>, %arg7: memref<1x16xf32, #tpu.memory_space<vmem>>, %arg8: memref<16x16xbf16, #tpu.memory_space<vmem>>, %arg9: memref<1x16xf32, #tpu.memory_space<vmem>>, %arg10: memref<4x4x16xbf16, #tpu.memory_space<vmem>>, %arg11: memref<1x16xf32, #tpu.memory_space<vmem>>, %arg12: memref<16x32xbf16, #tpu.memory_space<vmem>>, %arg13: memref<1x32xf32, #tpu.memory_space<vmem>>, %arg14: memref<4x16x32xf32, #tpu.memory_space<vmem>>) attributes {dimension_semantics = [#tpu.dimension_semantics<parallel>], iteration_bounds = array<i64: 2>, scalar_prefetch = 0 : i64, scratch_operands = 0 : i64, tpu.core_type = #tpu.core_type<tc>, window_params = [{transform_indices = @transform_0, window_bounds = array<i64: 4, 16, 64>}, {pipeline_mode = #tpu.pipeline_mode<synchronous>, transform_indices = @transform_1, window_bounds = array<i64: 64, 16>}, {pipeline_mode = #tpu.pipeline_mode<synchronous>, transform_indices = @transform_2, window_bounds = array<i64: 1, 16>}, {pipeline_mode = #tpu.pipeline_mode<synchronous>, transform_indices = @transform_3, window_bounds = array<i64: 16, 16>}, {pipeline_mode = #tpu.pipeline_mode<synchronous>, transform_indices = @transform_4, window_bounds = array<i64: 1, 16>}, {pipeline_mode = #tpu.pipeline_mode<synchronous>, transform_indices = @transform_5, window_bounds = array<i64: 16, 16>}, {pipeline_mode = #tpu.pipeline_mode<synchronous>, transform_indices = @transform_6, window_bounds = array<i64: 1, 16>}, {pipeline_mode = #tpu.pipeline_mode<synchronous>, transform_indices = @transform_7, window_bounds = array<i64: 16, 16>}, {pipeline_mode = #tpu.pipeline_mode<synchronous>, transform_indices = @transform_8, window_bounds = array<i64: 1, 16>}, {pipeline_mode = #tpu.pipeline_mode<synchronous>, transform_indices = @transform_9, window_bounds = array<i64: 4, 4, 16>}, {pipeline_mode = #tpu.pipeline_mode<synchronous>, transform_indices = @transform_10, window_bounds = array<i64: 1, 16>}, {pipeline_mode = #tpu.pipeline_mode<synchronous>, transform_indices = @transform_11, window_bounds = array<i64: 16, 32>}, {pipeline_mode = #tpu.pipeline_mode<synchronous>, transform_indices = @transform_12, window_bounds = array<i64: 1, 32>}, {transform_indices = @transform_13, window_bounds = array<i64: 4, 16, 32>}]} {
    %c0 = arith.constant 0 : index
    %c0_0 = arith.constant 0 : index
    %c0_1 = arith.constant 0 : index
    %0 = vector.load %arg1[%c0, %c0_0, %c0_1] : memref<4x16x64xf32, #tpu.memory_space<vmem>>, vector<4x16x64xf32>
    %1 = vector.shape_cast %0 : vector<4x16x64xf32> to vector<64x64xf32>
    %2 = arith.truncf %1 : vector<64x64xf32> to vector<64x64xbf16>
    %c0_2 = arith.constant 0 : index
    %c0_3 = arith.constant 0 : index
    %3 = vector.load %arg2[%c0_2, %c0_3] : memref<64x16xbf16, #tpu.memory_space<vmem>>, vector<64x16xbf16>
    %cst = arith.constant dense<0.000000e+00> : vector<64x16xf32>
    %4 = tpu.matmul %2, %3, %cst {dimension_numbers = #tpu.dot_dimension_numbers<[1], [0], [0], [1], [0, 0, 1, 1], [], []>} : vector<64x64xbf16>, vector<64x16xbf16>, vector<64x16xf32> -> vector<64x16xf32>
    %c0_4 = arith.constant 0 : index
    %c0_5 = arith.constant 0 : index
    %5 = vector.load %arg3[%c0_4, %c0_5] : memref<1x16xf32, #tpu.memory_space<vmem>>, vector<1x16xf32>
    %6 = vector.broadcast %5 : vector<1x16xf32> to vector<64x16xf32>
    %7 = arith.addf %4, %6 : vector<64x16xf32>
    %cst_6 = arith.constant 0.000000e+00 : f32
    %8 = vector.broadcast %cst_6 : f32 to vector<64x16xf32>
    %9 = arith.cmpf oge, %7, %8 : vector<64x16xf32>
    %cst_7 = arith.constant 1.000000e-01 : f32
    %10 = vector.broadcast %cst_7 : f32 to vector<64x16xf32>
    %11 = arith.mulf %10, %7 : vector<64x16xf32>
    %12 = arith.select %9, %7, %11 : vector<64x16xi1>, vector<64x16xf32>
    %13 = arith.truncf %12 : vector<64x16xf32> to vector<64x16xbf16>
    %c0_8 = arith.constant 0 : index
    %c0_9 = arith.constant 0 : index
    %14 = vector.load %arg4[%c0_8, %c0_9] : memref<16x16xbf16, #tpu.memory_space<vmem>>, vector<16x16xbf16>
    %cst_10 = arith.constant dense<0.000000e+00> : vector<64x16xf32>
    %15 = tpu.matmul %13, %14, %cst_10 {dimension_numbers = #tpu.dot_dimension_numbers<[1], [0], [0], [1], [0, 0, 1, 1], [], []>} : vector<64x16xbf16>, vector<16x16xbf16>, vector<64x16xf32> -> vector<64x16xf32>
    %c0_11 = arith.constant 0 : index
    %c0_12 = arith.constant 0 : index
    %16 = vector.load %arg5[%c0_11, %c0_12] : memref<1x16xf32, #tpu.memory_space<vmem>>, vector<1x16xf32>
    %17 = vector.broadcast %16 : vector<1x16xf32> to vector<64x16xf32>
    %18 = arith.addf %15, %17 : vector<64x16xf32>
    %cst_13 = arith.constant 0.000000e+00 : f32
    %19 = vector.broadcast %cst_13 : f32 to vector<64x16xf32>
    %20 = arith.cmpf oge, %18, %19 : vector<64x16xf32>
    %cst_14 = arith.constant 1.000000e-01 : f32
    %21 = vector.broadcast %cst_14 : f32 to vector<64x16xf32>
    %22 = arith.mulf %21, %18 : vector<64x16xf32>
    %23 = arith.select %20, %18, %22 : vector<64x16xi1>, vector<64x16xf32>
    %c0_15 = arith.constant 0 : index
    %c0_16 = arith.constant 0 : index
    %24 = vector.load %arg6[%c0_15, %c0_16] : memref<16x16xbf16, #tpu.memory_space<vmem>>, vector<16x16xbf16>
    %cst_17 = arith.constant dense<0.000000e+00> : vector<64x16xf32>
    %25 = tpu.matmul %13, %24, %cst_17 {dimension_numbers = #tpu.dot_dimension_numbers<[1], [0], [0], [1], [0, 0, 1, 1], [], []>} : vector<64x16xbf16>, vector<16x16xbf16>, vector<64x16xf32> -> vector<64x16xf32>
    %c0_18 = arith.constant 0 : index
    %c0_19 = arith.constant 0 : index
    %26 = vector.load %arg7[%c0_18, %c0_19] : memref<1x16xf32, #tpu.memory_space<vmem>>, vector<1x16xf32>
    %27 = vector.broadcast %26 : vector<1x16xf32> to vector<64x16xf32>
    %28 = arith.addf %25, %27 : vector<64x16xf32>
    %cst_20 = arith.constant 0.000000e+00 : f32
    %29 = vector.broadcast %cst_20 : f32 to vector<64x16xf32>
    %30 = arith.cmpf oge, %28, %29 : vector<64x16xf32>
    %cst_21 = arith.constant 1.000000e-01 : f32
    %31 = vector.broadcast %cst_21 : f32 to vector<64x16xf32>
    %32 = arith.mulf %31, %28 : vector<64x16xf32>
    %33 = arith.select %30, %28, %32 : vector<64x16xi1>, vector<64x16xf32>
    %c0_22 = arith.constant 0 : index
    %c0_23 = arith.constant 0 : index
    %34 = vector.load %arg8[%c0_22, %c0_23] : memref<16x16xbf16, #tpu.memory_space<vmem>>, vector<16x16xbf16>
    %cst_24 = arith.constant dense<0.000000e+00> : vector<64x16xf32>
    %35 = tpu.matmul %13, %34, %cst_24 {dimension_numbers = #tpu.dot_dimension_numbers<[1], [0], [0], [1], [0, 0, 1, 1], [], []>} : vector<64x16xbf16>, vector<16x16xbf16>, vector<64x16xf32> -> vector<64x16xf32>
    %c0_25 = arith.constant 0 : index
    %c0_26 = arith.constant 0 : index
    %36 = vector.load %arg9[%c0_25, %c0_26] : memref<1x16xf32, #tpu.memory_space<vmem>>, vector<1x16xf32>
    %37 = vector.broadcast %36 : vector<1x16xf32> to vector<64x16xf32>
    %38 = arith.addf %35, %37 : vector<64x16xf32>
    %cst_27 = arith.constant 0.000000e+00 : f32
    %39 = vector.broadcast %cst_27 : f32 to vector<64x16xf32>
    %40 = arith.cmpf oge, %38, %39 : vector<64x16xf32>
    %cst_28 = arith.constant 1.000000e-01 : f32
    %41 = vector.broadcast %cst_28 : f32 to vector<64x16xf32>
    %42 = arith.mulf %41, %38 : vector<64x16xf32>
    %43 = arith.select %40, %38, %42 : vector<64x16xi1>, vector<64x16xf32>
    %44 = arith.truncf %23 : vector<64x16xf32> to vector<64x16xbf16>
    %45 = vector.shape_cast %44 : vector<64x16xbf16> to vector<4x16x16xbf16>
    %46 = arith.truncf %33 : vector<64x16xf32> to vector<64x16xbf16>
    %47 = vector.shape_cast %46 : vector<64x16xbf16> to vector<4x16x16xbf16>
    %48 = arith.truncf %43 : vector<64x16xf32> to vector<64x16xbf16>
    %49 = vector.shape_cast %48 : vector<64x16xbf16> to vector<4x16x16xbf16>
    %c0_29 = arith.constant 0 : index
    %c0_30 = arith.constant 0 : index
    %50 = vector.load %arg11[%c0_29, %c0_30] : memref<1x16xf32, #tpu.memory_space<vmem>>, vector<1x16xf32>
    %51 = vector.shape_cast %50 : vector<1x16xf32> to vector<1x16xf32>
    %52 = vector.broadcast %51 : vector<1x16xf32> to vector<64x16xf32>
    %53 = vector.extract_strided_slice %45 {offsets = [0, 0, 0], sizes = [4, 16, 4], strides = [1, 1, 1]} : vector<4x16x16xbf16> to vector<4x16x4xbf16>
    %54 = vector.extract_strided_slice %47 {offsets = [0, 0, 0], sizes = [4, 16, 4], strides = [1, 1, 1]} : vector<4x16x16xbf16> to vector<4x16x4xbf16>
    %55 = vector.extract_strided_slice %49 {offsets = [0, 0, 0], sizes = [4, 16, 4], strides = [1, 1, 1]} : vector<4x16x16xbf16> to vector<4x16x4xbf16>
    "tpu.trace_start"() <{level = 10 : i32, message = "bnd,bmd->bnm"}> : () -> ()
    %cst_31 = arith.constant dense<0.000000e+00> : vector<4x16x16xf32>
    %56 = tpu.matmul %53, %54, %cst_31 {dimension_numbers = #tpu.dot_dimension_numbers<[2], [2], [1], [1], [0, 0, 0, 1, 1, 1], [0], [0]>} : vector<4x16x4xbf16>, vector<4x16x4xbf16>, vector<4x16x16xf32> -> vector<4x16x16xf32>
    "tpu.trace_stop"() : () -> ()
    %cst_32 = arith.constant 5.000000e-01 : f32
    %57 = vector.broadcast %cst_32 : f32 to vector<4x16x16xf32>
    %58 = arith.mulf %56, %57 : vector<4x16x16xf32>
    %cst_33 = arith.constant dense<0xFF800000> : vector<4x16xf32>
    %59 = vector.multi_reduction <maximumf>, %58, %cst_33 [2] : vector<4x16x16xf32> to vector<4x16xf32>
    %60 = vector.shape_cast %59 : vector<4x16xf32> to vector<4x16x1xf32>
    %61 = vector.broadcast %60 : vector<4x16x1xf32> to vector<4x16x16xf32>
    %62 = arith.subf %58, %61 : vector<4x16x16xf32>
    %63 = math.exp %62 : vector<4x16x16xf32>
    %cst_34 = arith.constant dense<0.000000e+00> : vector<4x16xf32>
    %64 = vector.multi_reduction <add>, %63, %cst_34 [2] : vector<4x16x16xf32> to vector<4x16xf32>
    %65 = vector.shape_cast %64 : vector<4x16xf32> to vector<4x16x1xf32>
    %66 = tpu.reciprocal %65 {approx = true} : vector<4x16x1xf32> -> vector<4x16x1xf32>
    %67 = vector.broadcast %66 : vector<4x16x1xf32> to vector<4x16x16xf32>
    %68 = arith.mulf %63, %67 : vector<4x16x16xf32>
    %69 = arith.truncf %68 : vector<4x16x16xf32> to vector<4x16x16xbf16>
    "tpu.trace_start"() <{level = 10 : i32, message = "bnm,bmd->bnd"}> : () -> ()
    %cst_35 = arith.constant dense<0.000000e+00> : vector<4x16x4xf32>
    %70 = tpu.matmul %69, %55, %cst_35 {dimension_numbers = #tpu.dot_dimension_numbers<[2], [1], [1], [2], [0, 0, 0, 1, 1, 2], [0], [0]>} : vector<4x16x16xbf16>, vector<4x16x4xbf16>, vector<4x16x4xf32> -> vector<4x16x4xf32>
    "tpu.trace_stop"() : () -> ()
    %71 = arith.truncf %70 : vector<4x16x4xf32> to vector<4x16x4xbf16>
    %72 = vector.shape_cast %71 : vector<4x16x4xbf16> to vector<64x4xbf16>
    %c0_36 = arith.constant 0 : index
    %c0_37 = arith.constant 0 : index
    %c0_38 = arith.constant 0 : index
    %73 = vector.load %arg10[%c0_36, %c0_37, %c0_38] : memref<4x4x16xbf16, #tpu.memory_space<vmem>>, vector<1x4x16xbf16>
    %74 = vector.shape_cast %73 : vector<1x4x16xbf16> to vector<4x16xbf16>
    %cst_39 = arith.constant dense<0.000000e+00> : vector<64x16xf32>
    %75 = tpu.matmul %72, %74, %cst_39 {dimension_numbers = #tpu.dot_dimension_numbers<[1], [0], [0], [1], [0, 0, 1, 1], [], []>} : vector<64x4xbf16>, vector<4x16xbf16>, vector<64x16xf32> -> vector<64x16xf32>
    %76 = arith.addf %52, %75 : vector<64x16xf32>
    %77 = vector.extract_strided_slice %45 {offsets = [0, 0, 4], sizes = [4, 16, 4], strides = [1, 1, 1]} : vector<4x16x16xbf16> to vector<4x16x4xbf16>
    %78 = vector.extract_strided_slice %47 {offsets = [0, 0, 4], sizes = [4, 16, 4], strides = [1, 1, 1]} : vector<4x16x16xbf16> to vector<4x16x4xbf16>
    %79 = vector.extract_strided_slice %49 {offsets = [0, 0, 4], sizes = [4, 16, 4], strides = [1, 1, 1]} : vector<4x16x16xbf16> to vector<4x16x4xbf16>
    "tpu.trace_start"() <{level = 10 : i32, message = "bnd,bmd->bnm"}> : () -> ()
    %cst_40 = arith.constant dense<0.000000e+00> : vector<4x16x16xf32>
    %80 = tpu.matmul %77, %78, %cst_40 {dimension_numbers = #tpu.dot_dimension_numbers<[2], [2], [1], [1], [0, 0, 0, 1, 1, 1], [0], [0]>} : vector<4x16x4xbf16>, vector<4x16x4xbf16>, vector<4x16x16xf32> -> vector<4x16x16xf32>
    "tpu.trace_stop"() : () -> ()
    %cst_41 = arith.constant 5.000000e-01 : f32
    %81 = vector.broadcast %cst_41 : f32 to vector<4x16x16xf32>
    %82 = arith.mulf %80, %81 : vector<4x16x16xf32>
    %cst_42 = arith.constant dense<0xFF800000> : vector<4x16xf32>
    %83 = vector.multi_reduction <maximumf>, %82, %cst_42 [2] : vector<4x16x16xf32> to vector<4x16xf32>
    %84 = vector.shape_cast %83 : vector<4x16xf32> to vector<4x16x1xf32>
    %85 = vector.broadcast %84 : vector<4x16x1xf32> to vector<4x16x16xf32>
    %86 = arith.subf %82, %85 : vector<4x16x16xf32>
    %87 = math.exp %86 : vector<4x16x16xf32>
    %cst_43 = arith.constant dense<0.000000e+00> : vector<4x16xf32>
    %88 = vector.multi_reduction <add>, %87, %cst_43 [2] : vector<4x16x16xf32> to vector<4x16xf32>
    %89 = vector.shape_cast %88 : vector<4x16xf32> to vector<4x16x1xf32>
    %90 = tpu.reciprocal %89 {approx = true} : vector<4x16x1xf32> -> vector<4x16x1xf32>
    %91 = vector.broadcast %90 : vector<4x16x1xf32> to vector<4x16x16xf32>
    %92 = arith.mulf %87, %91 : vector<4x16x16xf32>
    %93 = arith.truncf %92 : vector<4x16x16xf32> to vector<4x16x16xbf16>
    "tpu.trace_start"() <{level = 10 : i32, message = "bnm,bmd->bnd"}> : () -> ()
    %cst_44 = arith.constant dense<0.000000e+00> : vector<4x16x4xf32>
    %94 = tpu.matmul %93, %79, %cst_44 {dimension_numbers = #tpu.dot_dimension_numbers<[2], [1], [1], [2], [0, 0, 0, 1, 1, 2], [0], [0]>} : vector<4x16x16xbf16>, vector<4x16x4xbf16>, vector<4x16x4xf32> -> vector<4x16x4xf32>
    "tpu.trace_stop"() : () -> ()
    %95 = arith.truncf %94 : vector<4x16x4xf32> to vector<4x16x4xbf16>
    %96 = vector.shape_cast %95 : vector<4x16x4xbf16> to vector<64x4xbf16>
    %c1 = arith.constant 1 : index
    %c0_45 = arith.constant 0 : index
    %c0_46 = arith.constant 0 : index
    %97 = vector.load %arg10[%c1, %c0_45, %c0_46] : memref<4x4x16xbf16, #tpu.memory_space<vmem>>, vector<1x4x16xbf16>
    %98 = vector.shape_cast %97 : vector<1x4x16xbf16> to vector<4x16xbf16>
    %cst_47 = arith.constant dense<0.000000e+00> : vector<64x16xf32>
    %99 = tpu.matmul %96, %98, %cst_47 {dimension_numbers = #tpu.dot_dimension_numbers<[1], [0], [0], [1], [0, 0, 1, 1], [], []>} : vector<64x4xbf16>, vector<4x16xbf16>, vector<64x16xf32> -> vector<64x16xf32>
    %100 = arith.addf %76, %99 : vector<64x16xf32>
    %101 = vector.extract_strided_slice %45 {offsets = [0, 0, 8], sizes = [4, 16, 4], strides = [1, 1, 1]} : vector<4x16x16xbf16> to vector<4x16x4xbf16>
    %102 = vector.extract_strided_slice %47 {offsets = [0, 0, 8], sizes = [4, 16, 4], strides = [1, 1, 1]} : vector<4x16x16xbf16> to vector<4x16x4xbf16>
    %103 = vector.extract_strided_slice %49 {offsets = [0, 0, 8], sizes = [4, 16, 4], strides = [1, 1, 1]} : vector<4x16x16xbf16> to vector<4x16x4xbf16>
    "tpu.trace_start"() <{level = 10 : i32, message = "bnd,bmd->bnm"}> : () -> ()
    %cst_48 = arith.constant dense<0.000000e+00> : vector<4x16x16xf32>
    %104 = tpu.matmul %101, %102, %cst_48 {dimension_numbers = #tpu.dot_dimension_numbers<[2], [2], [1], [1], [0, 0, 0, 1, 1, 1], [0], [0]>} : vector<4x16x4xbf16>, vector<4x16x4xbf16>, vector<4x16x16xf32> -> vector<4x16x16xf32>
    "tpu.trace_stop"() : () -> ()
    %cst_49 = arith.constant 5.000000e-01 : f32
    %105 = vector.broadcast %cst_49 : f32 to vector<4x16x16xf32>
    %106 = arith.mulf %104, %105 : vector<4x16x16xf32>
    %cst_50 = arith.constant dense<0xFF800000> : vector<4x16xf32>
    %107 = vector.multi_reduction <maximumf>, %106, %cst_50 [2] : vector<4x16x16xf32> to vector<4x16xf32>
    %108 = vector.shape_cast %107 : vector<4x16xf32> to vector<4x16x1xf32>
    %109 = vector.broadcast %108 : vector<4x16x1xf32> to vector<4x16x16xf32>
    %110 = arith.subf %106, %109 : vector<4x16x16xf32>
    %111 = math.exp %110 : vector<4x16x16xf32>
    %cst_51 = arith.constant dense<0.000000e+00> : vector<4x16xf32>
    %112 = vector.multi_reduction <add>, %111, %cst_51 [2] : vector<4x16x16xf32> to vector<4x16xf32>
    %113 = vector.shape_cast %112 : vector<4x16xf32> to vector<4x16x1xf32>
    %114 = tpu.reciprocal %113 {approx = true} : vector<4x16x1xf32> -> vector<4x16x1xf32>
    %115 = vector.broadcast %114 : vector<4x16x1xf32> to vector<4x16x16xf32>
    %116 = arith.mulf %111, %115 : vector<4x16x16xf32>
    %117 = arith.truncf %116 : vector<4x16x16xf32> to vector<4x16x16xbf16>
    "tpu.trace_start"() <{level = 10 : i32, message = "bnm,bmd->bnd"}> : () -> ()
    %cst_52 = arith.constant dense<0.000000e+00> : vector<4x16x4xf32>
    %118 = tpu.matmul %117, %103, %cst_52 {dimension_numbers = #tpu.dot_dimension_numbers<[2], [1], [1], [2], [0, 0, 0, 1, 1, 2], [0], [0]>} : vector<4x16x16xbf16>, vector<4x16x4xbf16>, vector<4x16x4xf32> -> vector<4x16x4xf32>
    "tpu.trace_stop"() : () -> ()
    %119 = arith.truncf %118 : vector<4x16x4xf32> to vector<4x16x4xbf16>
    %120 = vector.shape_cast %119 : vector<4x16x4xbf16> to vector<64x4xbf16>
    %c2 = arith.constant 2 : index
    %c0_53 = arith.constant 0 : index
    %c0_54 = arith.constant 0 : index
    %121 = vector.load %arg10[%c2, %c0_53, %c0_54] : memref<4x4x16xbf16, #tpu.memory_space<vmem>>, vector<1x4x16xbf16>
    %122 = vector.shape_cast %121 : vector<1x4x16xbf16> to vector<4x16xbf16>
    %cst_55 = arith.constant dense<0.000000e+00> : vector<64x16xf32>
    %123 = tpu.matmul %120, %122, %cst_55 {dimension_numbers = #tpu.dot_dimension_numbers<[1], [0], [0], [1], [0, 0, 1, 1], [], []>} : vector<64x4xbf16>, vector<4x16xbf16>, vector<64x16xf32> -> vector<64x16xf32>
    %124 = arith.addf %100, %123 : vector<64x16xf32>
    %125 = vector.extract_strided_slice %45 {offsets = [0, 0, 12], sizes = [4, 16, 4], strides = [1, 1, 1]} : vector<4x16x16xbf16> to vector<4x16x4xbf16>
    %126 = vector.extract_strided_slice %47 {offsets = [0, 0, 12], sizes = [4, 16, 4], strides = [1, 1, 1]} : vector<4x16x16xbf16> to vector<4x16x4xbf16>
    %127 = vector.extract_strided_slice %49 {offsets = [0, 0, 12], sizes = [4, 16, 4], strides = [1, 1, 1]} : vector<4x16x16xbf16> to vector<4x16x4xbf16>
    "tpu.trace_start"() <{level = 10 : i32, message = "bnd,bmd->bnm"}> : () -> ()
    %cst_56 = arith.constant dense<0.000000e+00> : vector<4x16x16xf32>
    %128 = tpu.matmul %125, %126, %cst_56 {dimension_numbers = #tpu.dot_dimension_numbers<[2], [2], [1], [1], [0, 0, 0, 1, 1, 1], [0], [0]>} : vector<4x16x4xbf16>, vector<4x16x4xbf16>, vector<4x16x16xf32> -> vector<4x16x16xf32>
    "tpu.trace_stop"() : () -> ()
    %cst_57 = arith.constant 5.000000e-01 : f32
    %129 = vector.broadcast %cst_57 : f32 to vector<4x16x16xf32>
    %130 = arith.mulf %128, %129 : vector<4x16x16xf32>
    %cst_58 = arith.constant dense<0xFF800000> : vector<4x16xf32>
    %131 = vector.multi_reduction <maximumf>, %130, %cst_58 [2] : vector<4x16x16xf32> to vector<4x16xf32>
    %132 = vector.shape_cast %131 : vector<4x16xf32> to vector<4x16x1xf32>
    %133 = vector.broadcast %132 : vector<4x16x1xf32> to vector<4x16x16xf32>
    %134 = arith.subf %130, %133 : vector<4x16x16xf32>
    %135 = math.exp %134 : vector<4x16x16xf32>
    %cst_59 = arith.constant dense<0.000000e+00> : vector<4x16xf32>
    %136 = vector.multi_reduction <add>, %135, %cst_59 [2] : vector<4x16x16xf32> to vector<4x16xf32>
    %137 = vector.shape_cast %136 : vector<4x16xf32> to vector<4x16x1xf32>
    %138 = tpu.reciprocal %137 {approx = true} : vector<4x16x1xf32> -> vector<4x16x1xf32>
    %139 = vector.broadcast %138 : vector<4x16x1xf32> to vector<4x16x16xf32>
    %140 = arith.mulf %135, %139 : vector<4x16x16xf32>
    %141 = arith.truncf %140 : vector<4x16x16xf32> to vector<4x16x16xbf16>
    "tpu.trace_start"() <{level = 10 : i32, message = "bnm,bmd->bnd"}> : () -> ()
    %cst_60 = arith.constant dense<0.000000e+00> : vector<4x16x4xf32>
    %142 = tpu.matmul %141, %127, %cst_60 {dimension_numbers = #tpu.dot_dimension_numbers<[2], [1], [1], [2], [0, 0, 0, 1, 1, 2], [0], [0]>} : vector<4x16x16xbf16>, vector<4x16x4xbf16>, vector<4x16x4xf32> -> vector<4x16x4xf32>
    "tpu.trace_stop"() : () -> ()
    %143 = arith.truncf %142 : vector<4x16x4xf32> to vector<4x16x4xbf16>
    %144 = vector.shape_cast %143 : vector<4x16x4xbf16> to vector<64x4xbf16>
    %c3 = arith.constant 3 : index
    %c0_61 = arith.constant 0 : index
    %c0_62 = arith.constant 0 : index
    %145 = vector.load %arg10[%c3, %c0_61, %c0_62] : memref<4x4x16xbf16, #tpu.memory_space<vmem>>, vector<1x4x16xbf16>
    %146 = vector.shape_cast %145 : vector<1x4x16xbf16> to vector<4x16xbf16>
    %cst_63 = arith.constant dense<0.000000e+00> : vector<64x16xf32>
    %147 = tpu.matmul %144, %146, %cst_63 {dimension_numbers = #tpu.dot_dimension_numbers<[1], [0], [0], [1], [0, 0, 1, 1], [], []>} : vector<64x4xbf16>, vector<4x16xbf16>, vector<64x16xf32> -> vector<64x16xf32>
    %148 = arith.addf %124, %147 : vector<64x16xf32>
    %149 = arith.truncf %148 : vector<64x16xf32> to vector<64x16xbf16>
    %c0_64 = arith.constant 0 : index
    %c0_65 = arith.constant 0 : index
    %150 = vector.load %arg12[%c0_64, %c0_65] : memref<16x32xbf16, #tpu.memory_space<vmem>>, vector<16x32xbf16>
    %cst_66 = arith.constant dense<0.000000e+00> : vector<64x32xf32>
    %151 = tpu.matmul %149, %150, %cst_66 {dimension_numbers = #tpu.dot_dimension_numbers<[1], [0], [0], [1], [0, 0, 1, 1], [], []>} : vector<64x16xbf16>, vector<16x32xbf16>, vector<64x32xf32> -> vector<64x32xf32>
    %c0_67 = arith.constant 0 : index
    %c0_68 = arith.constant 0 : index
    %152 = vector.load %arg13[%c0_67, %c0_68] : memref<1x32xf32, #tpu.memory_space<vmem>>, vector<1x32xf32>
    %153 = vector.broadcast %152 : vector<1x32xf32> to vector<64x32xf32>
    %154 = arith.addf %151, %153 : vector<64x32xf32>
    %cst_69 = arith.constant 0.000000e+00 : f32
    %155 = vector.broadcast %cst_69 : f32 to vector<64x32xf32>
    %156 = arith.cmpf oge, %154, %155 : vector<64x32xf32>
    %cst_70 = arith.constant 1.000000e-01 : f32
    %157 = vector.broadcast %cst_70 : f32 to vector<64x32xf32>
    %158 = arith.mulf %157, %154 : vector<64x32xf32>
    %159 = arith.select %156, %154, %158 : vector<64x32xi1>, vector<64x32xf32>
    %160 = vector.shape_cast %159 : vector<64x32xf32> to vector<4x16x32xf32>
    %c0_71 = arith.constant 0 : index
    %c0_72 = arith.constant 0 : index
    %c0_73 = arith.constant 0 : index
    %161 = vector.load %arg14[%c0_71, %c0_72, %c0_73] : memref<4x16x32xf32, #tpu.memory_space<vmem>>, vector<4x16x32xf32>
    tpu.vector_store %arg14[%c0_71, %c0_72, %c0_73], %160 {strides = array<i32>} : memref<4x16x32xf32, #tpu.memory_space<vmem>>, vector<4x16x32xf32>,
    return
  }
  func.func @transform_0(%arg0: i32) -> (i32, i32, i32) {
    %c0_i32 = arith.constant 0 : i32
    %c0_i32_0 = arith.constant 0 : i32
    %c0_i32_1 = arith.constant 0 : i32
    return %arg0, %c0_i32, %c0_i32_0 : i32, i32, i32
  }
  func.func @transform_1(%arg0: i32) -> (i32, i32) {
    %c0_i32 = arith.constant 0 : i32
    %c0_i32_0 = arith.constant 0 : i32
    %c0_i32_1 = arith.constant 0 : i32
    return %c0_i32, %c0_i32_0 : i32, i32
  }
  func.func @transform_2(%arg0: i32) -> (i32, i32) {
    %c0_i32 = arith.constant 0 : i32
    %c0_i32_0 = arith.constant 0 : i32
    %c0_i32_1 = arith.constant 0 : i32
    return %c0_i32, %c0_i32_0 : i32, i32
  }
  func.func @transform_3(%arg0: i32) -> (i32, i32) {
    %c0_i32 = arith.constant 0 : i32
    %c0_i32_0 = arith.constant 0 : i32
    %c0_i32_1 = arith.constant 0 : i32
    return %c0_i32, %c0_i32_0 : i32, i32
  }
  func.func @transform_4(%arg0: i32) -> (i32, i32) {
    %c0_i32 = arith.constant 0 : i32
    %c0_i32_0 = arith.constant 0 : i32
    %c0_i32_1 = arith.constant 0 : i32
    return %c0_i32, %c0_i32_0 : i32, i32
  }
  func.func @transform_5(%arg0: i32) -> (i32, i32) {
    %c0_i32 = arith.constant 0 : i32
    %c0_i32_0 = arith.constant 0 : i32
    %c0_i32_1 = arith.constant 0 : i32
    return %c0_i32, %c0_i32_0 : i32, i32
  }
  func.func @transform_6(%arg0: i32) -> (i32, i32) {
    %c0_i32 = arith.constant 0 : i32
    %c0_i32_0 = arith.constant 0 : i32
    %c0_i32_1 = arith.constant 0 : i32
    return %c0_i32, %c0_i32_0 : i32, i32
  }
  func.func @transform_7(%arg0: i32) -> (i32, i32) {
    %c0_i32 = arith.constant 0 : i32
    %c0_i32_0 = arith.constant 0 : i32
    %c0_i32_1 = arith.constant 0 : i32
    return %c0_i32, %c0_i32_0 : i32, i32
  }
  func.func @transform_8(%arg0: i32) -> (i32, i32) {
    %c0_i32 = arith.constant 0 : i32
    %c0_i32_0 = arith.constant 0 : i32
    %c0_i32_1 = arith.constant 0 : i32
    return %c0_i32, %c0_i32_0 : i32, i32
  }
  func.func @transform_9(%arg0: i32) -> (i32, i32, i32) {
    %c0_i32 = arith.constant 0 : i32
    %c0_i32_0 = arith.constant 0 : i32
    %c0_i32_1 = arith.constant 0 : i32
    %c0_i32_2 = arith.constant 0 : i32
    return %c0_i32, %c0_i32_0, %c0_i32_1 : i32, i32, i32
  }
  func.func @transform_10(%arg0: i32) -> (i32, i32) {
    %c0_i32 = arith.constant 0 : i32
    %c0_i32_0 = arith.constant 0 : i32
    %c0_i32_1 = arith.constant 0 : i32
    return %c0_i32, %c0_i32_0 : i32, i32
  }
  func.func @transform_11(%arg0: i32) -> (i32, i32) {
    %c0_i32 = arith.constant 0 : i32
    %c0_i32_0 = arith.constant 0 : i32
    %c0_i32_1 = arith.constant 0 : i32
    return %c0_i32, %c0_i32_0 : i32, i32
  }
  func.func @transform_12(%arg0: i32) -> (i32, i32) {
    %c0_i32 = arith.constant 0 : i32
    %c0_i32_0 = arith.constant 0 : i32
    %c0_i32_1 = arith.constant 0 : i32
    return %c0_i32, %c0_i32_0 : i32, i32
  }
  func.func @transform_13(%arg0: i32) -> (i32, i32, i32) {
    %c0_i32 = arith.constant 0 : i32
    %c0_i32_0 = arith.constant 0 : i32
    %c0_i32_1 = arith.constant 0 : i32
    return %arg0, %c0_i32, %c0_i32_0 : i32, i32, i32
  }
}

</mosaic_0001>

<bundles_post_ra>
// kernel: tpu_custom_call.1
= control target key start
LH: loop header
LB: loop body
LE: loop exit
PB: predicated region body
PF: predicated region fallthrough
CT: control target
= control target key end

     0   :  { %18 = vsyncpa [#allocation3], 0  ;;  %s5101_s0 = inlined_call_operand.hbm [shape: f32[8,16,64], index: 0, kind: input, shape index: {}]   ;;  %s5102_s1 = inlined_call_operand.vmem [shape: bf16[64,16], index: 1, kind: input, shape index: {}]   ;;  %s5103_s2 = inlined_call_operand.vmem [shape: f32[1,16], index: 2, kind: input, shape index: {}]   ;;  %s5104_s3 = inlined_call_operand.vmem [shape: bf16[16,16], index: 3, kind: input, shape index: {}]   ;;  %s5105_s4 = inlined_call_operand.vmem [shape: f32[1,16], index: 4, kind: input, shape index: {}]   ;;  %s5106_s5 = inlined_call_operand.vmem [shape: bf16[16,16], index: 5, kind: input, shape index: {}]   ;;  %s5107_s6 = inlined_call_operand.vmem [shape: f32[1,16], index: 6, kind: input, shape index: {}]   ;;  %s5108_s7 = inlined_call_operand.vmem [shape: bf16[16,16], index: 7, kind: input, shape index: {}]   ;;  %s5109_s8 = inlined_call_operand.vmem [shape: f32[1,16], index: 8, kind: input, shape index: {}]   ;;  %s5110_s9 = inlined_call_operand.vmem [shape: bf16[4,4,16], index: 9, kind: input, shape index: {}]   ;;  %s5111_s10 = inlined_call_operand.vmem [shape: f32[1,16], index: 10, kind: input, shape index: {}]   ;;  %s5112_s11 = inlined_call_operand.vmem [shape: bf16[16,32], index: 11, kind: input, shape index: {}]   ;;  %s5113_s12 = inlined_call_operand.vmem [shape: f32[1,32], index: 12, kind: input, shape index: {}]   ;;  %s5114_s13 = inlined_call_operand.hbm [shape: f32[8,16,32], index: 13, kind: output, shape index: {}]  }
   0x1   :  { %20 = vsyncpa [#allocation3 + $0x1], 0 }
   0x2   :  { %21 = vsyncpa [#allocation4], 0 }
   0x3   :  { %23 = vsyncpa [#allocation4 + $0x1], 0  ;;  %s4421_s25 = smov 0   ;;  %s4423_s26 = smov 0  }
   0x4   :  { %s4425_s27 = smov 0   ;;  %s4427_s28 = smov 0  }
   0x5 LB: > { %5120 = sst [smem:[#allocation8_spill]] %s4326_s25  ;;  %s4442_s29 = sadd.s32 4294967295, %s4338_s28   ;;  %s4338_s28 = sphi %s4427_s28, %s5133_s28   ;;  %s4334_s27 = sphi %s4425_s27, %s5135_s27   ;;  %s4330_s26 = sphi %s4423_s26, %s5137_s26   ;;  %s4326_s25 = sphi %s4421_s25, %s5136_s25  }
   0x6   : > { %5121 = sst [smem:[#allocation9_spill]] %s4334_s27  ;;  %s3510_s30 = sadd.s32 4294967294, %s4338_s28  }
   0x7   : > { %s4446_s14 = sadd.s32 1, %s4338_s28   ;;  %s36_s15 = sadd.s32 1, %s4334_s27 }
   0x8   : > { %5122 = sst [smem:[#allocation10_spill]] %s4446_s14  ;;  %s33_s16 = ssub.s32 %s4338_s28, %s4446_s14 }
   0x9   : > { %p43_p0 = scmp.ne.s32.totalorder %s4334_s27, %s4330_s26  ;;  %p34_p1 = scmp.eq.s32.totalorder %s33_s16, 0 }
   0xa   : > { %p44_p2 = scmp.eq.s32.totalorder %s4338_s28, 0  ;;  %p49_p3 = scmp.ne.s32.totalorder %s4330_s26, %s4326_s25 }
   0xb   : > { %p50_p4 = scmp.eq.s32.totalorder %s4442_s29, 0  ;;  %p325_p7 = scmp.eq.s32.totalorder %s4442_s29, 1 }
   0xc   : > { %s4458_s17 = scalar_select %p34_p1, %s4334_s27, %s36_s15  }
   0xd   : > { %p4460_p5 = por %p44_p2, %p43_p0  ;;  %p4464_p6 = por %p50_p4, %p49_p3 }
   0xe   : > { %5123 = sst [smem:[#allocation11_spill]] %s4458_s17  ;;  %p331_p8 = scmp.eq.s32.totalorder %s3510_s30, 1 }
   0xf   : > { %p4063_p10 = scmp.lt.s32.totalorder %s4338_s28, 2  ;;  %p4471_p11 = por %p325_p7, %p43_p0 }
  0x10   : > { %p4475_p12 = por %p331_p8, %p49_p3  ;;  %s387_s22 = sand.u32 1, %s4334_s27  }
  0x11   : > { %s5126_s20 = scalar_select %p4471_p11, 1, 0 }
  0x12   : > { %s5127_s21 = scalar_select %p4475_p12, 1, 0 }
  0x13   : > { %s3612_s23 = sshll.u32 %s4338_s28, 10  ;;  %s3513_s24 = sshll.u32 %s387_s22, 6 }
  0x14   : > { %s4484_s17 = scalar_lea.hbm %s5101_s0, %s3612_s23  ;;  %s391_s30 = scalar_lea.vmem [#allocation2], %s3513_s24 }
  0x15   : > { %s399_s14 = sshll.u32 %s391_s30, 4  ;;  %p4488_p13 = pnand %p4063_p10, %p4460_p5  ;;  %s4492_s14 = int_to_ptr.vmem [resolvable:$true] %s399_s14 }
  0x16   : > { %s4494_s27 = scalar_lea.sflag [#allocation3], %s387_s22  ;;  %s4242_s15 = scalar_lea.hbm %s4484_s17, 1024 }
  0x17   : > { %p4243_p0 = scmp.ne.s32.totalorder %s4484_s17, %s4242_s15  ;;  %p4244_p1 = pneg %p4488_p13 }
  0x18   : > { %s4247_s24 = scalar_lea.hbm %s5101_s0, 2048  ;;  %p4248_p4 = scmp.lt.u32.totalorder %s4484_s17, %s5101_s0 }
  0x19   : > { %p4245_p2 = pnand %p4244_p1, %p4243_p0  ;;  %p4249_p5 = scmp.lt.u32.totalorder %s4247_s24, %s4242_s15 }
  0x1a   : > { %p4251_p8 = scmp.lt.u32.totalorder %s4242_s15, %s4484_s17 }
  0x1b   : > { %p4246_p3 = pneg %p4245_p2  ;;  %p4250_p7 = por %p4249_p5, %p4248_p4 }
  0x1d   : > { %p4252_p10 = por %p4251_p8, %p4250_p7 }
  0x1f   : > { %p4253_p9 = pnand %p4252_p10, %p4246_p3 }
  0x21   : > { %4256 = shalt.err (!%p4253_p9)
}
  0x22   : > { %s4257_s22 = scalar_lea.vmem %s4492_s14, 1024  ;;  %s4340_s23 = smov [#allocation2]  }
  0x23   : > { %p4258_p0 = scmp.ne.s32.totalorder %s4492_s14, %s4257_s22  ;;  %s4262_s18 = sshll.u32 %s4340_s23, 4  ;;  %s4263_s18 = int_to_ptr.vmem [resolvable:$false] %s4262_s18 }
  0x24   : > { %s4264_s16 = scalar_lea.vmem %s4263_s18, 2048  ;;  %p4265_p11 = scmp.lt.s32.totalorder %s4492_s14, %s4263_s18 }
  0x25   : > { %p4260_p2 = pnand %p4258_p0, %p4244_p1  ;;  %p4266_p4 = scmp.lt.s32.totalorder %s4264_s16, %s4257_s22 }
  0x27   : > { %p4261_p12 = pneg %p4260_p2  ;;  %p4267_p5 = por %p4266_p4, %p4265_p11 }
  0x29   : > { %p4268_p7 = pnand %p4267_p5, %p4261_p12 }
  0x2b   : > { %4271 = shalt.err (!%p4268_p7)
}
  0x2c   : > { %s4341_s15 = smov 128   ;;  %s4342_s24 = smov 8  }
  0x2d   : > { %4058 = dma.hbm_to_vmem [thread:$0]  (!%p4488_p13), %s4484_s17, 1024, %s4492_s14, %s4494_s27, %s4341_s15, %s4341_s15, %s4342_s24  }
  0x2e   : > { %p3517_p9 = scmp.ge.s32.totalorder %s4338_s28, 1  ;;  %p407_p1 = scmp.lt.s32.totalorder %s4338_s28, 3 }
  0x30   : > { %p408_p3 = pnand %p3517_p9, %p407_p1 }
  0x31   : > { %s4525_s30 = sand.u32 (!%p408_p3), 1, %s4330_s26  }
  0x32   : > { %411 = sbr.rel (%p408_p3) target bundleno = 4221 (0x107d), region = 72  ;;  %s3518_s22 = sshll.u32 (!%p408_p3), %s4525_s30, 6 }
  0x33   : > { %s414_s23 = scalar_lea.sflag (!%p408_p3), [#allocation3], %s4525_s30  ;;  %s417_s18 = scalar_lea.vmem (!%p408_p3), [#allocation2], %s3518_s22 }
  0x39   : > { %4317 = dma.done.wait (%p4464_p6), %s414_s23, 1024  }
  0x3a   : > { %4319 = vsyncadd (%p4464_p6), %s414_s23, 4294966272  ;;  %v4106_v0 = vld [vmem:[%s5102_s1] sm:$0xff]   ;;  %v4107_v1 = vld [vmem:[%s5102_s1 + $0x8] sm:$0xff]   ;;  %vm514_vm0 = vcmask 523264   ;;  %vm635_vm5 = vcmask 130048   ;;  %v4343_v56 = vmov 0.0  }
  0x3b   : > { %3727 = vmatprep.subr.bf16.mxu0 %v4106_v0  ;;  %v4108_v2 = vld [vmem:[%s5102_s1 + $0x10] sm:$0xff]   ;;  %v463_v3 = vld [vmem:[%s417_s18] sm:$0xff]  ;;  %v464_v4 = vld [vmem:[%s417_s18 + $0x8] sm:$0xff]  ;;  %vm4344_vm10 = vmmov 0   ;;  %s4345_s17 = smov 124   ;;  %s4346_s15 = smov 120  }
  0x3c   : > { %3728 = vmatpush3.bf16.msra.mxu0 %v4106_v0  ;;  %v471_v5 = vpack.c.bf16 %v464_v4, %v463_v3  ;;  %v4109_v6 = vld [vmem:[%s5102_s1 + $0x18] sm:$0xff]   ;;  %v465_v7 = vld [vmem:[%s417_s18 + $0x10] sm:$0xff]  ;;  %v467_v9 = vld [vmem:[%s417_s18 + $0x20] sm:$0xff]  ;;  %s4347_s23 = smov 116   ;;  %s5032_s25 = scalar_lea.vmem [#allocation5], %s3518_s22 }
  0x3d   : > { %3729 = vmatprep.subr.bf16.mxu0 %v4107_v1  ;;  %v466_v8 = vld [vmem:[%s417_s18 + $0x18] sm:$0xff]  ;;  %v468_v10 = vld [vmem:[%s417_s18 + $0x28] sm:$0xff]  ;;  %v469_v13 = vld [vmem:[%s417_s18 + $0x30] sm:$0xff]  ;;  %s3614_s22 = sshll.u32 %s4442_s29, 10  ;;  %s3437_s27 = sshll.u32 %s5032_s25, 4  ;;  %s5051_s27 = int_to_ptr.vmem [resolvable:$true] %s3437_s27 }
  0x3e   : > { %3735 = vmatprep.mubr.msk.bf16.mxu0 %vm514_vm0, %v471_v5  ;;  %v472_v11 = vpack.c.bf16 %v466_v8, %v465_v7  ;;  %v473_v12 = vpack.c.bf16 %v468_v10, %v467_v9  ;;  %v470_v14 = vld [vmem:[%s417_s18 + $0x38] sm:$0xff]  ;;  %v4110_v16 = vld [vmem:[%s5104_s3] sm:$0xff]   ;;  %s5049_s29 = scalar_lea.hbm %s5114_s13, %s3614_s22  ;;  %s3423_s16 = scalar_lea.sflag [#allocation4], %s4525_s30 }
  0x3f   : > { %v474_v15 = vpack.c.bf16 %v470_v14, %v469_v13  ;;  %v4111_v17 = vld [vmem:[%s5108_s7] sm:$0xff]   ;;  %3743 = vmatprep.subr.bf16.mxu1 %v4110_v16  ;;  %s4272_s18 = scalar_lea.vmem %s5051_s27, 1024  ;;  %p5129_p11 = scmp.ne.s32.totalorder %s5126_s20, 0 }
  0x40   : > { %3730 = vmatpush3.bf16.msra.mxu0 %v4107_v1  ;;  %3744 = vmatpush3.bf16.msra.mxu1 %v4110_v16  ;;  %v4112_v18 = vld [vmem:[%s5106_s5] sm:$0xff]   ;;  %p4273_p6 = scmp.ne.s32.totalorder %s5051_s27, %s4272_s18 }
  0x41   : > { %3731 = vmatprep.subr.bf16.mxu0 %v4108_v2  ;;  %3753 = vmatprep.subr.bf16.mxu1 %v4112_v18  ;;  %v3520_v19 = vld [vmem:[%s5103_s2] ss:$0 sm:$0xff] }
  0x42   : > { %v4584_v57 = vld [vmem:[%s5105_s4] ss:$0 sm:$0xff]  ;;  %p4274_p12 = pnand %p4273_p6, %p5129_p11 }
  0x43   : > { %v4589_v58 = vld [vmem:[%s5109_s8] ss:$0 sm:$0xff] }
  0x44   : > { %3732 = vmatpush3.bf16.msra.mxu0 %v4108_v2  ;;  %p4275_p13 = pneg %p4274_p12 }
  0x45   : > { %3733 = vmatprep.subr.bf16.mxu0 %v4109_v6 }
  0x48   : > { %3734 = vmatpush3.bf16.msra.mxu0 %v4109_v6 }
  0x49   : > { %3763 = vmatprep.subr.bf16.mxu0 %v4111_v17 }
  0x4b   : > { %3736 = vmatmul.mubr.msk.bf16.vlgmr.msra.gmra.mrb[0].mxu0 %vm514_vm0, %v472_v11 }
  0x4c   : > { %3739 = vmatprep.mubr.msk.bf16.mxu0 %vm514_vm0, %v473_v12  ;;  %3764 = vmatpush3.bf16.msra.mxu0 %v4111_v17 }
  0x4d   : > { %3785 = vmatprep.subr.bf16.mxu0 %v4343_v56 }
  0x53   : > { %3740 = vmatmul.mubr.msk.bf16.gmra.mrb[4].mxu0 %vm514_vm0, %v474_v15 }
 0x11e   : > { %v3737_v20 = vpop.f32.mrb[0].mxu0 }
 0x11f   : > { %v570_v21 = vadd.f32 %v3737_v20, %v3520_v19  ;;  %v561_v22 = vpop.f32.mrb[1].mxu0 }
 0x120   : > { %v562_v23 = vadd.f32 %v3520_v19, %v561_v22  ;;  %v3738_v24 = vpop.f32.mrb[2].mxu0 }
 0x121   : > { %v602_v25 = vmul.f32 0.1, %v570_v21  ;;  %v573_v26 = vadd.f32 %v3738_v24, %v3520_v19  ;;  %v564_v27 = vpop.f32.mrb[3].mxu0  ;;  %vm594_vm1 = vcmp.ge.f32.partialorder %v570_v21, 0.0 }
 0x122   : > { %v600_v28 = vmul.f32 0.1, %v562_v23  ;;  %v565_v29 = vadd.f32 %v3520_v19, %v564_v27  ;;  %vm592_vm2 = vcmp.ge.f32.partialorder %v562_v23, 0.0 }
 0x123   : > { %vm595_vm3 = vcmp.ge.f32.partialorder %v573_v26, 0.0  ;;  %v603_v30 = vmul.f32 0.1, %v573_v26  ;;  %v610_v32 = vsel %vm594_vm1, %v570_v21, %v602_v25 }
 0x124   : > { %vm593_vm4 = vcmp.ge.f32.partialorder %v565_v29, 0.0  ;;  %v601_v31 = vmul.f32 0.1, %v565_v29  ;;  %v608_v36 = vsel %vm592_vm2, %v562_v23, %v600_v28 }
 0x125   : > { %v611_v33 = vsel %vm595_vm3, %v573_v26, %v603_v30 }
 0x126   : > { %v617_v34 = vpack.c.bf16 %v611_v33, %v610_v32  ;;  %v3741_v35 = vpop.f32.mrb[4].mxu0  ;;  %v609_v37 = vsel %vm593_vm4, %v565_v29, %v601_v31 }
 0x127   : > { %v586_v38 = vadd.f32 %v3741_v35, %v3520_v19  ;;  %v577_v39 = vpop.f32.mrb[5].mxu0  ;;  %v616_v40 = vpack.c.bf16 %v609_v37, %v608_v36 }
 0x128   : > { %v578_v41 = vadd.f32 %v3520_v19, %v577_v39  ;;  %v3742_v42 = vpop.f32.mrb[6].mxu0 }
 0x129   : > { %v606_v43 = vmul.f32 0.1, %v586_v38  ;;  %v589_v44 = vadd.f32 %v3742_v42, %v3520_v19  ;;  %v580_v45 = vpop.f32.mrb[7].mxu0  ;;  %3745 = vmatprep.mubr.msk.bf16.mxu1 %vm635_vm5, %v616_v40  ;;  %3765 = vmatprep.mubr.msk.bf16.mxu0 %vm635_vm5, %v616_v40  ;;  %vm598_vm6 = vcmp.ge.f32.partialorder %v586_v38, 0.0 }
 0x12a   : > { %v604_v46 = vmul.f32 0.1, %v578_v41  ;;  %v581_v47 = vadd.f32 %v3520_v19, %v580_v45  ;;  %3746 = vmatmul.mubr.msk.bf16.vlgmr.msra.gmra.mrb[0].mxu1 %vm635_vm5, %v617_v34  ;;  %3766 = vmatmul.mubr.msk.bf16.vlgmr.msra.gmra.mrb[8].mxu0 %vm635_vm5, %v617_v34  ;;  %vm596_vm7 = vcmp.ge.f32.partialorder %v578_v41, 0.0 }
 0x12b   : > { %vm599_vm8 = vcmp.ge.f32.partialorder %v589_v44, 0.0  ;;  %v607_v48 = vmul.f32 0.1, %v589_v44  ;;  %3754 = vmatpush3.bf16.msra.mxu1 %v4112_v18  ;;  %v614_v50 = vsel %vm598_vm6, %v586_v38, %v606_v43 }
 0x12c   : > { %vm597_vm9 = vcmp.ge.f32.partialorder %v581_v47, 0.0  ;;  %v605_v49 = vmul.f32 0.1, %v581_v47  ;;  %v612_v52 = vsel %vm596_vm7, %v578_v41, %v604_v46  ;;  %3773 = vmatprep.subr.bf16.mxu1 %v4343_v56 }
 0x12d   : > { %v615_v51 = vsel %vm599_vm8, %v589_v44, %v607_v48 }
 0x12e   : > { %v619_v53 = vpack.c.bf16 %v615_v51, %v614_v50  ;;  %v613_v54 = vsel %vm597_vm9, %v581_v47, %v605_v49  ;;  %v3535_v47 = vld [vmem:[%s5107_s6] ss:$0 sm:$0xff] }
 0x12f   : > { %v618_v55 = vpack.c.bf16 %v613_v54, %v612_v52 }
 0x131   : > { %3749 = vmatprep.mubr.msk.bf16.mxu1 %vm635_vm5, %v618_v55  ;;  %3769 = vmatprep.mubr.msk.bf16.mxu0 %vm635_vm5, %v618_v55 }
 0x132   : > { %3750 = vmatmul.mubr.msk.bf16.gmra.mrb[4].mxu1 %vm635_vm5, %v619_v53  ;;  %3770 = vmatmul.mubr.msk.bf16.gmra.mrb[12].mxu0 %vm635_vm5, %v619_v53 }
 0x133   : > { %3755 = vmatprep.mubr.msk.bf16.mxu1 %vm635_vm5, %v616_v40  ;;  %3787 = vmatprep.mubr.msk.bf16.mxu0 %vm4344_vm10, %v4343_v56 }
 0x13a   : > { %3756 = vmatmul.mubr.msk.bf16.vlgmr.msra.gmra.mrb[8].mxu1 %vm635_vm5, %v617_v34 }
 0x13b   : > { %3759 = vmatprep.mubr.msk.bf16.mxu1 %vm635_vm5, %v618_v55 }
 0x142   : > { %3760 = vmatmul.mubr.msk.bf16.gmra.mrb[12].mxu1 %vm635_vm5, %v619_v53 }
 0x143   : > { %3775 = vmatprep.mubr.msk.bf16.mxu1 %vm4344_vm10, %v4343_v56 }
 0x1fd   : > { %v3747_v59 = vpop.f32.mrb[0].mxu1  ;;  %v3767_v60 = vpop.f32.mrb[8].mxu0 }
 0x1fe   : > { %v691_v61 = vadd.f32 %v3747_v59, %v4584_v57  ;;  %v899_v62 = vadd.f32 %v3767_v60, %v4589_v58  ;;  %v682_v63 = vpop.f32.mrb[1].mxu1  ;;  %v890_v0 = vpop.f32.mrb[9].mxu0 }
 0x1ff   : > { %v683_v1 = vadd.f32 %v4584_v57, %v682_v63  ;;  %v891_v2 = vadd.f32 %v4589_v58, %v890_v0  ;;  %v3748_v3 = vpop.f32.mrb[2].mxu1  ;;  %v3768_v4 = vpop.f32.mrb[10].mxu0 }
 0x200   : > { %vm715_vm11 = vcmp.ge.f32.partialorder %v691_v61, 0.0  ;;  %v723_v5 = vmul.f32 0.1, %v691_v61  ;;  %vm923_vm12 = vcmp.ge.f32.partialorder %v899_v62, 0.0  ;;  %v931_v6 = vmul.f32 0.1, %v899_v62 }
 0x201   : > { %vm713_vm13 = vcmp.ge.f32.partialorder %v683_v1, 0.0  ;;  %v721_v7 = vmul.f32 0.1, %v683_v1  ;;  %vm921_vm14 = vcmp.ge.f32.partialorder %v891_v2, 0.0  ;;  %v929_v8 = vmul.f32 0.1, %v891_v2 }
 0x202   : > { %v694_v9 = vadd.f32 %v3748_v3, %v4584_v57  ;;  %v902_v10 = vadd.f32 %v3768_v4, %v4589_v58  ;;  %v685_v11 = vpop.f32.mrb[3].mxu1  ;;  %v893_v12 = vpop.f32.mrb[11].mxu0  ;;  %v731_v13 = vsel %vm715_vm11, %v691_v61, %v723_v5  ;;  %v939_v14 = vsel %vm923_vm12, %v899_v62, %v931_v6 }
 0x203   : > { %v686_v15 = vadd.f32 %v4584_v57, %v685_v11  ;;  %v894_v16 = vadd.f32 %v4589_v58, %v893_v12  ;;  %v729_v21 = vsel %vm713_vm13, %v683_v1, %v721_v7  ;;  %v937_v22 = vsel %vm921_vm14, %v891_v2, %v929_v8 }
 0x204   : > { %vm716_vm15 = vcmp.ge.f32.partialorder %v694_v9, 0.0  ;;  %v724_v17 = vmul.f32 0.1, %v694_v9  ;;  %vm924_vm0 = vcmp.ge.f32.partialorder %v902_v10, 0.0  ;;  %v932_v18 = vmul.f32 0.1, %v902_v10 }
 0x205   : > { %vm714_vm1 = vcmp.ge.f32.partialorder %v686_v15, 0.0  ;;  %v722_v19 = vmul.f32 0.1, %v686_v15  ;;  %vm922_vm2 = vcmp.ge.f32.partialorder %v894_v16, 0.0  ;;  %v930_v20 = vmul.f32 0.1, %v894_v16 }
 0x206   : > { %v732_v23 = vsel %vm716_vm15, %v694_v9, %v724_v17  ;;  %v940_v24 = vsel %vm924_vm0, %v902_v10, %v932_v18  ;;  %v3751_v25 = vpop.f32.mrb[4].mxu1  ;;  %v3771_v26 = vpop.f32.mrb[12].mxu0 }
 0x207   : > { %v4601_v27 = vpack.c.bf16 %v732_v23, %v731_v13  ;;  %v4603_v28 = vpack.c.bf16 %v940_v24, %v939_v14  ;;  %v730_v29 = vsel %vm714_vm1, %v686_v15, %v722_v19  ;;  %v938_v30 = vsel %vm922_vm2, %v894_v16, %v930_v20  ;;  %v698_v31 = vpop.f32.mrb[5].mxu1  ;;  %v906_v32 = vpop.f32.mrb[13].mxu0 }
 0x208   : > { %v4605_v33 = vpack.c.bf16 %v730_v29, %v729_v21  ;;  %v4607_v34 = vpack.c.bf16 %v938_v30, %v937_v22  ;;  %v707_v35 = vadd.f32 %v3751_v25, %v4584_v57  ;;  %v915_v36 = vadd.f32 %v3771_v26, %v4589_v58  ;;  %v3752_v37 = vpop.f32.mrb[6].mxu1  ;;  %v3772_v38 = vpop.f32.mrb[14].mxu0 }
 0x209   : > { %v699_v39 = vadd.f32 %v4584_v57, %v698_v31  ;;  %v907_v40 = vadd.f32 %v4589_v58, %v906_v32  ;;  %v710_v41 = vadd.f32 %v3752_v37, %v4584_v57  ;;  %v918_v42 = vadd.f32 %v3772_v38, %v4589_v58  ;;  %v701_v43 = vpop.f32.mrb[7].mxu1  ;;  %v909_v44 = vpop.f32.mrb[15].mxu0 }
 0x20a   : > { %vm719_vm3 = vcmp.ge.f32.partialorder %v707_v35, 0.0  ;;  %v727_v45 = vmul.f32 0.1, %v707_v35  ;;  %vm927_vm4 = vcmp.ge.f32.partialorder %v915_v36, 0.0  ;;  %v935_v46 = vmul.f32 0.1, %v915_v36 }
 0x20b   : > { %vm717_vm6 = vcmp.ge.f32.partialorder %v699_v39, 0.0  ;;  %v725_v48 = vmul.f32 0.1, %v699_v39  ;;  %vm925_vm7 = vcmp.ge.f32.partialorder %v907_v40, 0.0  ;;  %vm720_vm8 = vcmp.ge.f32.partialorder %v710_v41, 0.0 }
 0x20c   : > { %v728_v49 = vmul.f32 0.1, %v710_v41  ;;  %v735_v50 = vsel %vm719_vm3, %v707_v35, %v727_v45  ;;  %v933_v51 = vmul.f32 0.1, %v907_v40  ;;  %vm928_vm9 = vcmp.ge.f32.partialorder %v918_v42, 0.0 }
 0x20d   : > { %v936_v52 = vmul.f32 0.1, %v918_v42  ;;  %v3757_v53 = vpop.f32.mrb[8].mxu1  ;;  %v702_v55 = vadd.f32 %v4584_v57, %v701_v43  ;;  %v910_v59 = vadd.f32 %v4589_v58, %v909_v44  ;;  %v943_v62 = vsel %vm927_vm4, %v915_v36, %v935_v46 }
 0x20e   : > { %v736_v54 = vsel %vm720_vm8, %v710_v41, %v728_v49  ;;  %v795_v60 = vadd.f32 %v3757_v53, %v3535_v47  ;;  %v786_v61 = vpop.f32.mrb[9].mxu1  ;;  %v733_v6 = vsel %vm717_vm6, %v699_v39, %v725_v48  ;;  %v941_v57 = vsel %vm925_vm7, %v907_v40, %v933_v51 }
 0x20f   : > { %v4621_v63 = vpack.c.bf16 %v736_v54, %v735_v50  ;;  %v944_v0 = vsel %vm928_vm9, %v918_v42, %v936_v52  ;;  %v787_v1 = vadd.f32 %v3535_v47, %v786_v61  ;;  %v3758_v2 = vpop.f32.mrb[10].mxu1  ;;  %vm718_vm11 = vcmp.ge.f32.partialorder %v702_v55, 0.0 }
 0x210   : > { %v4623_v3 = vpack.c.bf16 %v944_v0, %v943_v62  ;;  %v726_v4 = vmul.f32 0.1, %v702_v55  ;;  %vm926_vm12 = vcmp.ge.f32.partialorder %v910_v59, 0.0  ;;  %v789_v5 = vpop.f32.mrb[11].mxu1  ;;  %v934_v58 = vmul.f32 0.1, %v910_v59 }
 0x211   : > { %v827_v8 = vmul.f32 0.1, %v795_v60  ;;  %v798_v9 = vadd.f32 %v3758_v2, %v3535_v47  ;;  %v790_v10 = vadd.f32 %v3535_v47, %v789_v5  ;;  %vm819_vm13 = vcmp.ge.f32.partialorder %v795_v60, 0.0 }
 0x212   : > { %v734_v7 = vsel %vm718_vm11, %v702_v55, %v726_v4  ;;  %v942_v12 = vsel %vm926_vm12, %v910_v59, %v934_v58  ;;  %v825_v13 = vmul.f32 0.1, %v787_v1  ;;  %vm817_vm14 = vcmp.ge.f32.partialorder %v787_v1, 0.0 }
 0x213   : > { %v4627_v11 = vpack.c.bf16 %v734_v7, %v733_v6  ;;  %v4629_v14 = vpack.c.bf16 %v942_v12, %v941_v57  ;;  %vm820_vm15 = vcmp.ge.f32.partialorder %v798_v9, 0.0  ;;  %v828_v15 = vmul.f32 0.1, %v798_v9 }
 0x214   : > { %vm818_vm0 = vcmp.ge.f32.partialorder %v790_v10, 0.0  ;;  %v826_v16 = vmul.f32 0.1, %v790_v10  ;;  %v835_v18 = vsel %vm819_vm13, %v795_v60, %v827_v8  ;;  %vm964_vm1 = vcmask 31744  }
 0x215   : > { %v3761_v17 = vpop.f32.mrb[12].mxu1  ;;  %v836_v19 = vsel %vm820_vm15, %v798_v9, %v828_v15  ;;  %v833_v22 = vsel %vm817_vm14, %v787_v1, %v825_v13  ;;  %vm1446_vm7 = vcmask 1041408   ;;  %vm3413_vm8 = vcmask 261120  }
 0x216   : > { %v811_v20 = vadd.f32 %v3761_v17, %v3535_v47  ;;  %v802_v21 = vpop.f32.mrb[13].mxu1  ;;  %v4631_v23 = vpack.c.bf16 %v836_v19, %v835_v18  ;;  %v834_v24 = vsel %vm818_vm0, %v790_v10, %v826_v16 }
 0x217   : > { %v803_v25 = vadd.f32 %v3535_v47, %v802_v21  ;;  %v3762_v26 = vpop.f32.mrb[14].mxu1  ;;  %v4633_v29 = vpack.c.bf16 %v834_v24, %v833_v22 }
 0x218   : > { %v831_v30 = vmul.f32 0.1, %v811_v20  ;;  %v814_v31 = vadd.f32 %v3762_v26, %v3535_v47  ;;  %v805_v32 = vpop.f32.mrb[15].mxu1  ;;  %vm823_vm2 = vcmp.ge.f32.partialorder %v811_v20, 0.0 }
 0x219   : > { %v829_v35 = vmul.f32 0.1, %v803_v25  ;;  %v806_v36 = vadd.f32 %v3535_v47, %v805_v32  ;;  %vm821_vm3 = vcmp.ge.f32.partialorder %v803_v25, 0.0  ;;  %v969_v38 = vsel %vm964_vm1, %v4633_v29, 0 }
 0x21a   : > { %vm824_vm4 = vcmp.ge.f32.partialorder %v814_v31, 0.0  ;;  %v832_v37 = vmul.f32 0.1, %v814_v31  ;;  %3774 = vmatpush3.bf16.xpose.msra.mxu1 %v969_v38  ;;  %v839_v40 = vsel %vm823_vm2, %v811_v20, %v831_v30  ;;  %v1016_v47 = vsel %vm964_vm1, %v4631_v23, 0 }
 0x21b   : > { %vm822_vm6 = vcmp.ge.f32.partialorder %v806_v36, 0.0  ;;  %v830_v39 = vmul.f32 0.1, %v806_v36  ;;  %3779 = vmatprep.subr.bf16.mxu1 %v4343_v56  ;;  %v837_v42 = vsel %vm821_vm3, %v803_v25, %v829_v35 }
 0x21c   : > { %v840_v41 = vsel %vm824_vm4, %v814_v31, %v832_v37 }
 0x21d   : > { %v4638_v43 = vpack.c.bf16 %v840_v41, %v839_v40  ;;  %v838_v44 = vsel %vm822_vm6, %v806_v36, %v830_v39 }
 0x21e   : > { %v4640_v45 = vpack.c.bf16 %v838_v44, %v837_v42 }
 0x21f   : > { %v1110_v48 = vsel %vm964_vm1, %v4638_v43, 0 }
 0x220   : > { %v1063_v46 = vsel %vm964_vm1, %v4640_v45, 0 }
 0x221   : > { %3786 = vmatpush3.bf16.xpose.msra.mxu0 %v1063_v46  ;;  %3776 = vmatmul.mubr.msk.bf16.vlgmr.msra.gmra.mrb[16].mxu1 %vm964_vm1, %v4605_v33 }
 0x222   : > { %3797 = vmatprep.subr.bf16.mxu0 %v4343_v56  ;;  %3780 = vmatpush3.bf16.xpose.msra.mxu1 %v1016_v47 }
 0x223   : > { %3781 = vmatprep.mubr.msk.bf16.mxu1 %vm4344_vm10, %v4343_v56  ;;  %3791 = vmatprep.subr.bf16.mxu1 %v4343_v56 }
 0x228   : > { %3788 = vmatmul.mubr.msk.bf16.vlgmr.msra.gmra.mrb[16].mxu0 %vm964_vm1, %v4627_v11 }
 0x229   : > { %3798 = vmatpush3.bf16.msra.mxu0 %v4607_v34  ;;  %3799 = vmatprep.mubr.msk.bf16.mxu0 %vm4344_vm10, %v4343_v56 }
 0x22a   : > { %3782 = vmatmul.mubr.msk.bf16.vlgmr.msra.gmra.mrb[20].mxu1 %vm964_vm1, %v4601_v27  ;;  %3809 = vmatprep.subr.bf16.mxu0 %v4343_v56 }
 0x22b   : > { %3792 = vmatpush3.bf16.xpose.msra.mxu1 %v1110_v48  ;;  %3793 = vmatprep.mubr.msk.bf16.mxu1 %vm4344_vm10, %v4343_v56 }
 0x22c   : > { %3803 = vmatprep.subr.bf16.mxu1 %v4343_v56 }
 0x232   : > { %3794 = vmatmul.mubr.msk.bf16.vlgmr.msra.gmra.mrb[24].mxu1 %vm964_vm1, %v4621_v63 }
 0x233   : > { %3804 = vmatpush3.bf16.msra.mxu1 %v4603_v28  ;;  %3805 = vmatprep.mubr.msk.bf16.mxu1 %vm4344_vm10, %v4343_v56 }
 0x234   : > { %3815 = vmatprep.subr.bf16.mxu1 %v4343_v56 }
 0x2f4   : > { %v1005_v49 = vpop.f32.mrb[16].mxu1 }
 0x2f5   : > { %v1153_v50 = vmul.f32 0.5, %v1005_v49  ;;  %v3777_v51 = vpop.f32.mrb[17].mxu1 }
 0x2f6   : > { %v1008_v52 = vpop.f32.mrb[18].mxu1 }
 0x2f7   : > { %v1154_v53 = vmul.f32 0.5, %v1008_v52  ;;  %v3778_v54 = vpop.f32.mrb[19].mxu1  ;;  %v1161_v55 = vsel %vm635_vm5, %v1153_v50, -inf }
 0x2f8   : > { %1162 = vmax.xlane.f32.xlu0 %v1161_v55 }
 0x2f9   : > { %v1164_v61 = vsel %vm635_vm5, %v1154_v53, -inf }
 0x2fb   : > { %v1099_v59 = vpop.f32.mrb[16].mxu0 }
 0x2fc   : > { %v1157_v60 = vmul.f32 0.5, %v1099_v59  ;;  %v3789_v62 = vpop.f32.mrb[17].mxu0  ;;  %1165 = vmax.xlane.f32.xlu0 %v1164_v61 }
 0x2fd   : > { %v1052_v0 = vpop.f32.mrb[20].mxu1  ;;  %v1102_v1 = vpop.f32.mrb[18].mxu0 }
 0x2fe   : > { %v1155_v2 = vmul.f32 0.5, %v1052_v0  ;;  %v3783_v4 = vpop.f32.mrb[21].mxu1  ;;  %v3790_v5 = vpop.f32.mrb[19].mxu0  ;;  %v1173_v6 = vsel %vm635_vm5, %v1157_v60, -inf  ;;  %v1158_v9 = vmul.f32 0.5, %v1102_v1 }
 0x2ff   : > { %v1055_v57 = vpop.f32.mrb[22].mxu1 }
 0x300   : > { %v1156_v58 = vmul.f32 0.5, %v1055_v57  ;;  %v3784_v7 = vpop.f32.mrb[23].mxu1  ;;  %v1167_v8 = vsel %vm635_vm5, %v1155_v2, -inf  ;;  %1174 = vmax.xlane.f32.xlu0 %v1173_v6  ;;  %v1176_v19 = vsel %vm635_vm5, %v1158_v9, -inf }
 0x301   : > { %1168 = vmax.xlane.f32.xlu1 %v1167_v8 }
 0x302   : > { %v1170_v10 = vsel %vm635_vm5, %v1156_v58, -inf }
 0x305   : > { %1171 = vmax.xlane.f32.xlu1 %v1170_v10  ;;  %v1146_v12 = vpop.f32.mrb[24].mxu1 }
 0x306   : > { %v1159_v13 = vmul.f32 0.5, %v1146_v12  ;;  %v3795_v15 = vpop.f32.mrb[25].mxu1 }
 0x307   : > { %v1149_v16 = vpop.f32.mrb[26].mxu1 }
 0x308   : > { %v1160_v17 = vmul.f32 0.5, %v1149_v16  ;;  %v3796_v18 = vpop.f32.mrb[27].mxu1  ;;  %v1179_v20 = vsel %vm635_vm5, %v1159_v13, -inf }
 0x309   : > { %1177 = vmax.xlane.f32.xlu1 %v1176_v19  ;;  %1180 = vmax.xlane.f32.xlu0 %v1179_v20 }
 0x30a   : > { %v1182_v21 = vsel %vm635_vm5, %v1160_v17, -inf }
 0x30d   : > { %1183 = vmax.xlane.f32.xlu1 %v1182_v21 }
 0x385   : > { %v1163_v22 = vpop.xlane.xlu0 %1162 }
 0x386   : > { %v1185_v24 = vsub.f32 %v1153_v50, %v1163_v22 }
 0x388   : > { %v1193_v25 = vmul.f32 1.442695, %v1185_v24 }
 0x389   : > { %v1166_v26 = vpop.xlane.xlu0 %1165 }
 0x38a   : > { %4114 = vpow2.f32 %v1193_v25  ;;  %v1186_v30 = vsub.f32 %v1154_v53, %v1166_v26 }
 0x38c   : > { %v1195_v31 = vmul.f32 1.442695, %v1186_v30 }
 0x38d   : > { %v1175_v32 = vpop.xlane.xlu0 %1174 }
 0x38e   : > { %v1169_v35 = vpop.xlane.xlu1 %1168  ;;  %4116 = vpow2.f32 %v1195_v31  ;;  %v1189_v36 = vsub.f32 %v1157_v60, %v1175_v32 }
 0x38f   : > { %v1187_v37 = vsub.f32 %v1155_v2, %v1169_v35 }
 0x390   : > { %v1201_v39 = vmul.f32 1.442695, %v1189_v36 }
 0x391   : > { %v1197_v38 = vmul.f32 1.442695, %v1187_v37 }
 0x392   : > { %v1172_v40 = vpop.xlane.xlu1 %1171 }
 0x393   : > { %v1188_v41 = vsub.f32 %v1156_v58, %v1172_v40  ;;  %4118 = vpow2.f32 %v1197_v38 }
 0x394   : > { %v4115_v42 = vpop.eup %4114  ;;  %4120 = vpow2.f32 %v1201_v39 }
 0x395   : > { %v1199_v44 = vmul.f32 1.442695, %v1188_v41  ;;  %v1209_v48 = vsel %vm635_vm5, %v4115_v42, 0.0 }
 0x396   : > { %v1178_v46 = vpop.xlane.xlu1 %1177  ;;  %v1181_v47 = vpop.xlane.xlu0 %1180  ;;  %1210 = vadd.xlane.f32.xlu0 %v1209_v48 }
 0x397   : > { %4122 = vpow2.f32 %v1199_v44  ;;  %v1190_v49 = vsub.f32 %v1158_v9, %v1178_v46  ;;  %v1191_v50 = vsub.f32 %v1159_v13, %v1181_v47 }
 0x398   : > { %v4117_v51 = vpop.eup %4116 }
 0x399   : > { %v1203_v52 = vmul.f32 1.442695, %v1190_v49  ;;  %v1205_v53 = vmul.f32 1.442695, %v1191_v50  ;;  %v1212_v55 = vsel %vm635_vm5, %v4117_v51, 0.0 }
 0x39a   : > { %v1184_v54 = vpop.xlane.xlu1 %1183  ;;  %1213 = vadd.xlane.f32.xlu1 %v1212_v55 }
 0x39b   : > { %4124 = vpow2.f32 %v1203_v52  ;;  %v1192_v59 = vsub.f32 %v1160_v17, %v1184_v54 }
 0x39c   : > { %4126 = vpow2.f32 %v1205_v53 }
 0x39d   : > { %v1207_v60 = vmul.f32 1.442695, %v1192_v59  ;;  %v4119_v61 = vpop.eup %4118 }
 0x39e   : > { %v1215_v62 = vsel %vm635_vm5, %v4119_v61, 0.0  ;;  %v4121_v0 = vpop.eup %4120 }
 0x39f   : > { %4128 = vpow2.f32 %v1207_v60  ;;  %1216 = vadd.xlane.f32.xlu0 %v1215_v62  ;;  %v1221_v4 = vsel %vm635_vm5, %v4121_v0, 0.0  ;;  %v1433_v60 = vld [vmem:[%s5110_s9] sm:$0x3] }
 0x3a1   : > { %v4123_v1 = vpop.eup %4122 }
 0x3a2   : > { %v1218_v2 = vsel %vm635_vm5, %v4123_v1, 0.0 }
 0x3a3   : > { %1219 = vadd.xlane.f32.xlu1 %v1218_v2  ;;  %1222 = vadd.xlane.f32.xlu0 %v1221_v4 }
 0x3a5   : > { %v4125_v5 = vpop.eup %4124 }
 0x3a6   : > { %v4127_v6 = vpop.eup %4126  ;;  %v1224_v57 = vsel %vm635_vm5, %v4125_v5, 0.0 }
 0x3a7   : > { %v1227_v58 = vsel %vm635_vm5, %v4127_v6, 0.0  ;;  %1225 = vadd.xlane.f32.xlu1 %v1224_v57 }
 0x3a8   : > { %1228 = vadd.xlane.f32.xlu0 %v1227_v58 }
 0x3a9   : > { %v4129_v7 = vpop.eup %4128 }
 0x3aa   : > { %v1230_v8 = vsel %vm635_vm5, %v4129_v7, 0.0 }
 0x3ab   : > { %1231 = vadd.xlane.f32.xlu1 %v1230_v8 }
 0x3bc   : > { %1524 = vrot.lane.b32.xlu1 %v4605_v33, %s4345_s17 }
 0x3be   : > { %1527 = vrot.lane.b32.xlu0 %v4633_v29, %s4345_s17 }
 0x3c0   : > { %1580 = vrot.lane.b32.xlu1 %v4631_v23, %s4345_s17 }
 0x3c2   : > { %1577 = vrot.lane.b32.xlu0 %v4601_v27, %s4345_s17 }
 0x3c4   : > { %1633 = vrot.lane.b32.xlu1 %v4640_v45, %s4345_s17 }
 0x3c6   : > { %1630 = vrot.lane.b32.xlu0 %v4627_v11, %s4345_s17 }
 0x3c8   : > { %1686 = vrot.lane.b32.xlu1 %v4638_v43, %s4345_s17 }
 0x3cc   : > { %1683 = vrot.lane.b32.xlu1 %v4621_v63, %s4345_s17 }
 0x423   : > { %v1211_v9 = vpop.xlane.xlu0 %1210 }
 0x424   : > { %4130 = vrcp.f32 %v1211_v9 }
 0x427   : > { %v1214_v10 = vpop.xlane.xlu1 %1213 }
 0x428   : > { %4132 = vrcp.f32 %v1214_v10 }
 0x42c   : > { %v1217_v12 = vpop.xlane.xlu0 %1216 }
 0x42d   : > { %4134 = vrcp.f32 %v1217_v12 }
 0x42e   : > { %v4131_v15 = vpop.eup %4130 }
 0x42f   : > { %v1241_v18 = vmul.f32 %v4131_v15, %v4115_v42 }
 0x430   : > { %v1220_v13 = vpop.xlane.xlu1 %1219  ;;  %v1223_v16 = vpop.xlane.xlu0 %1222 }
 0x431   : > { %4136 = vrcp.f32 %v1220_v13 }
 0x432   : > { %v4133_v17 = vpop.eup %4132  ;;  %4138 = vrcp.f32 %v1223_v16 }
 0x433   : > { %v1242_v19 = vmul.f32 %v4133_v17, %v4117_v51 }
 0x434   : > { %v1226_v20 = vpop.xlane.xlu1 %1225 }
 0x435   : > { %v1229_v21 = vpop.xlane.xlu0 %1228  ;;  %4140 = vrcp.f32 %v1226_v20  ;;  %v1249_v22 = vpack.c.bf16 %v1242_v19, %v1241_v18 }
 0x436   : > { %4142 = vrcp.f32 %v1229_v21 }
 0x437   : > { %3800 = vmatmul.mubr.msk.bf16.vlgmr.msra.gmra.mrb[20].mxu0 %vm635_vm5, %v1249_v22  ;;  %v4135_v25 = vpop.eup %4134 }
 0x438   : > { %v1232_v24 = vpop.xlane.xlu1 %1231  ;;  %3810 = vmatpush3.bf16.msra.mxu0 %v4629_v14  ;;  %3811 = vmatprep.mubr.msk.bf16.mxu0 %vm4344_vm10, %v4343_v56  ;;  %v1243_v30 = vmul.f32 %v4135_v25, %v4119_v61  ;;  %v1448_v61 = vsel %vm1446_vm7, %v1433_v60, 0 }
 0x439   : > { %4144 = vrcp.f32 %v1232_v24  ;;  %v1528_v47 = vpop.permute.xlu0 %1527  ;;  %4047 = vmatprep.subr.msk.bf16.mxu0 %vm1446_vm7, %v1433_v60 }
 0x43a   : > { %v1533_v49 = vsel %vm964_vm1, %v1528_v47, 0 }
 0x43b   : > { %v4137_v26 = vpop.eup %4136 }
 0x43c   : > { %v1244_v31 = vmul.f32 %v4137_v26, %v4123_v1  ;;  %v4139_v32 = vpop.eup %4138  ;;  %v1525_v46 = vpop.permute.xlu1 %1524 }
 0x43d   : > { %v1245_v37 = vmul.f32 %v4139_v32, %v4121_v0  ;;  %v1578_v54 = vpop.permute.xlu0 %1577 }
 0x43e   : > { %v1250_v35 = vpack.c.bf16 %v1244_v31, %v1243_v30 }
 0x43f   : > { %v4141_v36 = vpop.eup %4140 }
 0x440   : > { %v1246_v38 = vmul.f32 %v4141_v36, %v4125_v5  ;;  %3806 = vmatmul.mubr.msk.bf16.vlgmr.msra.gmra.mrb[28].mxu1 %vm635_vm5, %v1250_v35  ;;  %v4143_v39 = vpop.eup %4142  ;;  %v1581_v50 = vpop.permute.xlu1 %1580 }
 0x441   : > { %3816 = vmatpush3.bf16.msra.mxu1 %v4623_v3  ;;  %3817 = vmatprep.mubr.msk.bf16.mxu1 %vm4344_vm10, %v4343_v56  ;;  %v1247_v42 = vmul.f32 %v4143_v39, %v4127_v6  ;;  %v1586_v52 = vsel %vm964_vm1, %v1581_v50, 0  ;;  %v1631_v26 = vpop.permute.xlu0 %1630 }
 0x442   : > { %v1251_v40 = vpack.c.bf16 %v1246_v38, %v1245_v37  ;;  %3831 = vmatprep.subr.bf16.mxu1 %v4343_v56 }
 0x443   : > { %v4145_v41 = vpop.eup %4144 }
 0x444   : > { %v1248_v44 = vmul.f32 %v4145_v41, %v4129_v7  ;;  %3812 = vmatmul.mubr.msk.bf16.vlgmr.msra.gmra.mrb[24].mxu0 %vm635_vm5, %v1251_v40  ;;  %v1634_v51 = vpop.permute.xlu1 %1633 }
 0x445   : > { %3822 = vmatpush3.bf16.msra.mxu0 %v1448_v61  ;;  %v1639_v9 = vsel %vm964_vm1, %v1634_v51, 0 }
 0x446   : > { %v1252_v48 = vpack.c.bf16 %v1248_v44, %v1247_v42  ;;  %3843 = vmatprep.subr.bf16.mxu0 %v4343_v56 }
 0x448   : > { %3818 = vmatmul.mubr.msk.bf16.vlgmr.msra.gmra.mrb[32].mxu1 %vm635_vm5, %v1252_v48  ;;  %v1687_v53 = vpop.permute.xlu1 %1686 }
 0x449   : > { %3833 = vmatprep.mubr.msk.bf16.mxu1 %vm4344_vm10, %v4343_v56  ;;  %v1692_v55 = vsel %vm964_vm1, %v1687_v53, 0 }
 0x44a   : > { %3832 = vmatpush3.bf16.xpose.msra.mxu1 %v1533_v49 }
 0x44b   : > { %3837 = vmatprep.subr.bf16.mxu1 %v4343_v56 }
 0x44c   : > { %v1684_v59 = vpop.permute.xlu1 %1683 }
 0x451   : > { %3834 = vmatmul.mubr.msk.bf16.vlgmr.msra.gmra.mrb[36].mxu1 %vm964_vm1, %v1525_v46 }
 0x452   : > { %3838 = vmatpush3.bf16.xpose.msra.mxu1 %v1586_v52  ;;  %3839 = vmatprep.mubr.msk.bf16.mxu1 %vm4344_vm10, %v4343_v56 }
 0x453   : > { %3849 = vmatprep.subr.bf16.mxu1 %v4343_v56 }
 0x459   : > { %3840 = vmatmul.mubr.msk.bf16.vlgmr.msra.gmra.mrb[40].mxu1 %vm964_vm1, %v1578_v54 }
 0x45a   : > { %3850 = vmatpush3.bf16.xpose.msra.mxu1 %v1692_v55  ;;  %3851 = vmatprep.mubr.msk.bf16.mxu1 %vm4344_vm10, %v4343_v56 }
 0x45b   : > { %3861 = vmatprep.subr.bf16.mxu1 %v4343_v56 }
 0x461   : > { %3852 = vmatmul.mubr.msk.bf16.vlgmr.msra.gmra.mrb[44].mxu1 %vm964_vm1, %v1684_v59 }
 0x462   : > { %3863 = vmatprep.mubr.msk.bf16.mxu1 %vm4344_vm10, %v4343_v56 }
 0x50a   : > { %v1290_v62 = vpop.f32.mrb[20].mxu0 }
 0x50b   : > { %v3801_v0 = vpop.f32.mrb[21].mxu0 }
 0x50c   : > { %v1293_v1 = vpop.f32.mrb[22].mxu0 }
 0x50d   : > { %v1429_v2 = vpack.c.bf16 %v1293_v1, %v1290_v62  ;;  %v3802_v4 = vpop.f32.mrb[23].mxu0 }
 0x50f   : > { %3823 = vmatprep.mubr.msk.bf16.mxu0 %vm964_vm1, %v1429_v2 }
 0x513   : > { %v1334_v5 = vpop.f32.mrb[28].mxu1 }
 0x514   : > { %v3807_v6 = vpop.f32.mrb[29].mxu1 }
 0x515   : > { %v1337_v57 = vpop.f32.mrb[30].mxu1 }
 0x516   : > { %v1430_v58 = vpack.c.bf16 %v1337_v57, %v1334_v5  ;;  %v3808_v7 = vpop.f32.mrb[31].mxu1 }
 0x517   : > { %v1378_v8 = vpop.f32.mrb[24].mxu0 }
 0x518   : > { %v3813_v10 = vpop.f32.mrb[25].mxu0  ;;  %3824 = vmatmul.mubr.msk.bf16.vlgmr.msra.gmra.mrb[28].mxu0 %vm964_vm1, %v1430_v58 }
 0x519   : > { %3844 = vmatpush3.bf16.xpose.msra.mxu0 %v1639_v9  ;;  %v1381_v12 = vpop.f32.mrb[26].mxu0 }
 0x51a   : > { %v1431_v13 = vpack.c.bf16 %v1381_v12, %v1378_v8  ;;  %v3814_v15 = vpop.f32.mrb[27].mxu0  ;;  %3855 = vmatprep.subr.bf16.mxu0 %v4343_v56 }
 0x51b   : > { %v1422_v16 = vpop.f32.mrb[32].mxu1 }
 0x51c   : > { %v3819_v17 = vpop.f32.mrb[33].mxu1  ;;  %3827 = vmatprep.mubr.msk.bf16.mxu0 %vm964_vm1, %v1431_v13 }
 0x51d   : > { %v1425_v18 = vpop.f32.mrb[34].mxu1 }
 0x51e   : > { %v1432_v19 = vpack.c.bf16 %v1425_v18, %v1422_v16  ;;  %v3820_v20 = vpop.f32.mrb[35].mxu1 }
 0x520   : > { %3828 = vmatmul.mubr.msk.bf16.gmra.mrb[32].mxu0 %vm964_vm1, %v1432_v19 }
 0x521   : > { %3845 = vmatprep.mubr.msk.bf16.mxu0 %vm4344_vm10, %v4343_v56 }
 0x524   : > { %v1569_v21 = vpop.f32.mrb[36].mxu1 }
 0x525   : > { %v1735_v22 = vmul.f32 0.5, %v1569_v21  ;;  %v3835_v24 = vpop.f32.mrb[37].mxu1 }
 0x526   : > { %v1572_v25 = vpop.f32.mrb[38].mxu1 }
 0x527   : > { %v1736_v30 = vmul.f32 0.5, %v1572_v25  ;;  %v3836_v31 = vpop.f32.mrb[39].mxu1  ;;  %v1743_v32 = vsel %vm635_vm5, %v1735_v22, -inf }
 0x528   : > { %1744 = vmax.xlane.f32.xlu0 %v1743_v32  ;;  %3846 = vmatmul.mubr.msk.bf16.vlgmr.msra.gmra.mrb[36].mxu0 %vm964_vm1, %v1631_v26 }
 0x529   : > { %v1746_v35 = vsel %vm635_vm5, %v1736_v30, -inf  ;;  %3857 = vmatprep.mubr.msk.bf16.mxu0 %vm4344_vm10, %v4343_v56 }
 0x52a   : > { %1747 = vmax.xlane.f32.xlu1 %v1746_v35 }
 0x52c   : > { %v1622_v36 = vpop.f32.mrb[40].mxu1 }
 0x52d   : > { %v1737_v37 = vmul.f32 0.5, %v1622_v36  ;;  %v3841_v38 = vpop.f32.mrb[41].mxu1 }
 0x52e   : > { %v1625_v39 = vpop.f32.mrb[42].mxu1 }
 0x52f   : > { %v1738_v40 = vmul.f32 0.5, %v1625_v39  ;;  %v3842_v41 = vpop.f32.mrb[43].mxu1  ;;  %v1749_v42 = vsel %vm635_vm5, %v1737_v37, -inf }
 0x530   : > { %1750 = vmax.xlane.f32.xlu0 %v1749_v42 }
 0x531   : > { %v1752_v44 = vsel %vm635_vm5, %v1738_v40, -inf }
 0x534   : > { %1753 = vmax.xlane.f32.xlu0 %v1752_v44  ;;  %v1728_v46 = vpop.f32.mrb[44].mxu1 }
 0x535   : > { %v3853_v47 = vpop.f32.mrb[45].mxu1  ;;  %v1741_v57 = vmul.f32 0.5, %v1728_v46 }
 0x536   : > { %v1731_v48 = vpop.f32.mrb[46].mxu1 }
 0x537   : > { %v3854_v49 = vpop.f32.mrb[47].mxu1  ;;  %v1742_v9 = vmul.f32 0.5, %v1731_v48  ;;  %v1761_v12 = vsel %vm635_vm5, %v1741_v57, -inf }
 0x539   : > { %v1764_v15 = vsel %vm635_vm5, %v1742_v9, -inf }
 0x5b5   : > { %v1745_v50 = vpop.xlane.xlu0 %1744 }
 0x5b6   : > { %v1767_v53 = vsub.f32 %v1735_v22, %v1745_v50 }
 0x5b7   : > { %v1748_v52 = vpop.xlane.xlu1 %1747 }
 0x5b8   : > { %v1768_v54 = vsub.f32 %v1736_v30, %v1748_v52  ;;  %v1775_v59 = vmul.f32 1.442695, %v1767_v53 }
 0x5ba   : > { %v1777_v61 = vmul.f32 1.442695, %v1768_v54  ;;  %4146 = vpow2.f32 %v1775_v59 }
 0x5bc   : > { %4148 = vpow2.f32 %v1777_v61 }
 0x5bd   : > { %v1751_v51 = vpop.xlane.xlu0 %1750 }
 0x5be   : > { %v1769_v60 = vsub.f32 %v1737_v37, %v1751_v51 }
 0x5c0   : > { %v1779_v0 = vmul.f32 1.442695, %v1769_v60 }
 0x5c1   : > { %v1754_v55 = vpop.xlane.xlu0 %1753 }
 0x5c2   : > { %v1770_v62 = vsub.f32 %v1738_v40, %v1754_v55  ;;  %4150 = vpow2.f32 %v1779_v0 }
 0x5c4   : > { %v1781_v1 = vmul.f32 1.442695, %v1770_v62  ;;  %v4755_v13 = vpop.eup %4146 }
 0x5c5   : > { %v1791_v17 = vsel %vm635_vm5, %v4755_v13, 0.0 }
 0x5c6   : > { %4152 = vpow2.f32 %v1781_v1  ;;  %v4758_v16 = vpop.eup %4148 }
 0x5c7   : > { %v1794_v19 = vsel %vm635_vm5, %v4758_v16, 0.0 }
 0x5cc   : > { %v4762_v18 = vpop.eup %4150 }
 0x5cd   : > { %v1797_v21 = vsel %vm635_vm5, %v4762_v18, 0.0 }
 0x5d0   : > { %v4153_v20 = vpop.eup %4152 }
 0x5d1   : > { %v1800_v22 = vsel %vm635_vm5, %v4153_v20, 0.0 }
 0x5fb   : > { %v1675_v2 = vpop.f32.mrb[36].mxu0 }
 0x5fc   : > { %v1739_v4 = vmul.f32 0.5, %v1675_v2  ;;  %v3847_v5 = vpop.f32.mrb[37].mxu0 }
 0x5fd   : > { %v1678_v6 = vpop.f32.mrb[38].mxu0 }
 0x5fe   : > { %v1740_v58 = vmul.f32 0.5, %v1678_v6  ;;  %v3848_v7 = vpop.f32.mrb[39].mxu0  ;;  %v1755_v8 = vsel %vm635_vm5, %v1739_v4, -inf }
 0x5ff   : > { %1756 = vmax.xlane.f32.xlu0 %v1755_v8 }
 0x600   : > { %v1758_v10 = vsel %vm635_vm5, %v1740_v58, -inf }
 0x601   : > { %1759 = vmax.xlane.f32.xlu1 %v1758_v10 }
 0x603   : > { %1762 = vmax.xlane.f32.xlu0 %v1761_v12 }
 0x605   : > { %1765 = vmax.xlane.f32.xlu1 %v1764_v15 }
 0x607   : > { %1792 = vadd.xlane.f32.xlu0 %v1791_v17 }
 0x609   : > { %1795 = vadd.xlane.f32.xlu1 %v1794_v19 }
 0x60b   : > { %1798 = vadd.xlane.f32.xlu0 %v1797_v21 }
 0x60d   : > { %1801 = vadd.xlane.f32.xlu1 %v1800_v22 }
 0x68c   : > { %v1757_v24 = vpop.xlane.xlu0 %1756 }
 0x68d   : > { %v1771_v25 = vsub.f32 %v1739_v4, %v1757_v24 }
 0x68e   : > { %v1760_v26 = vpop.xlane.xlu1 %1759 }
 0x68f   : > { %v1783_v32 = vmul.f32 1.442695, %v1771_v25  ;;  %v1772_v47 = vsub.f32 %v1740_v58, %v1760_v26 }
 0x690   : > { %v1763_v30 = vpop.xlane.xlu0 %1762 }
 0x691   : > { %v1773_v31 = vsub.f32 %v1741_v57, %v1763_v30  ;;  %v1785_v48 = vmul.f32 1.442695, %v1772_v47 }
 0x692   : > { %v1766_v35 = vpop.xlane.xlu1 %1765 }
 0x693   : > { %v1787_v36 = vmul.f32 1.442695, %v1773_v31  ;;  %v1774_v37 = vsub.f32 %v1742_v9, %v1766_v35  ;;  %v3568_v9 = vld [vmem:[%s5110_s9 + $0x2] sm:$0x3] }
 0x694   : > { %v1793_v52 = vpop.xlane.xlu0 %1792 }
 0x695   : > { %4154 = vpow2.f32 %v1787_v36  ;;  %v1789_v38 = vmul.f32 1.442695, %v1774_v37 }
 0x696   : > { %4156 = vpow2.f32 %v1783_v32  ;;  %v1796_v51 = vpop.xlane.xlu1 %1795  ;;  %v2046_v32 = vsel %vm1446_vm7, %v3568_v9, 0 }
 0x697   : > { %4158 = vpow2.f32 %v1789_v38 }
 0x698   : > { %4160 = vpow2.f32 %v1785_v48  ;;  %v1799_v54 = vpop.xlane.xlu0 %1798 }
 0x69a   : > { %v1802_v53 = vpop.xlane.xlu1 %1801 }
 0x69b   : > { %4162 = vrcp.f32 %v1802_v53 }
 0x69c   : > { %4164 = vrcp.f32 %v1796_v51 }
 0x69d   : > { %4166 = vrcp.f32 %v1799_v54 }
 0x69e   : > { %4168 = vrcp.f32 %v1793_v52 }
 0x69f   : > { %v4769_v39 = vpop.eup %4154 }
 0x6a0   : > { %v4771_v40 = vpop.eup %4156  ;;  %v1809_v41 = vsel %vm635_vm5, %v4769_v39, 0.0 }
 0x6a1   : > { %v4775_v42 = vpop.eup %4158  ;;  %1810 = vadd.xlane.f32.xlu0 %v1809_v41  ;;  %v1803_v46 = vsel %vm635_vm5, %v4771_v40, 0.0 }
 0x6a2   : > { %v1812_v44 = vsel %vm635_vm5, %v4775_v42, 0.0  ;;  %v4161_v49 = vpop.eup %4160 }
 0x6a3   : > { %1813 = vadd.xlane.f32.xlu1 %v1812_v44  ;;  %v1806_v50 = vsel %vm635_vm5, %v4161_v49, 0.0 }
 0x6a5   : > { %1804 = vadd.xlane.f32.xlu0 %v1803_v46  ;;  %v4163_v59 = vpop.eup %4162 }
 0x6a6   : > { %v4165_v60 = vpop.eup %4164  ;;  %v1826_v0 = vmul.f32 %v4163_v59, %v4153_v20 }
 0x6a7   : > { %v4167_v62 = vpop.eup %4166  ;;  %v1824_v4 = vmul.f32 %v4165_v60, %v4758_v16 }
 0x6a8   : > { %v4169_v2 = vpop.eup %4168  ;;  %v1825_v5 = vmul.f32 %v4167_v62, %v4762_v18 }
 0x6a9   : > { %v1823_v57 = vmul.f32 %v4169_v2, %v4755_v13 }
 0x6aa   : > { %v1832_v7 = vpack.c.bf16 %v1826_v0, %v1825_v5 }
 0x6ab   : > { %v1831_v8 = vpack.c.bf16 %v1824_v4, %v1823_v57 }
 0x6b4   : > { %1884 = vrot.lane.b32.xlu1 %v4603_v28, %s4345_s17 }
 0x6b8   : > { %1932 = vrot.lane.b32.xlu1 %v4629_v14, %s4345_s17 }
 0x6bb   : > { %1836 = vrot.lane.b32.xlu0 %v4607_v34, %s4345_s17 }
 0x6bf   : > { %2123 = vrot.lane.b32.xlu0 %v4633_v29, %s4346_s15 }
 0x6c3   : > { %2174 = vrot.lane.b32.xlu0 %v4631_v23, %s4346_s15 }
 0x6c7   : > { %2172 = vrot.lane.b32.xlu0 %v4601_v27, %s4346_s15 }
 0x6cb   : > { %2223 = vrot.lane.b32.xlu0 %v4627_v11, %s4346_s15 }
 0x6dc   : > { %1807 = vadd.xlane.f32.xlu1 %v1806_v50 }
 0x6ed   : > { %1980 = vrot.lane.b32.xlu1 %v4623_v3, %s4345_s17 }
 0x6f1   : > { %2121 = vrot.lane.b32.xlu1 %v4605_v33, %s4346_s15 }
 0x6f5   : > { %2225 = vrot.lane.b32.xlu1 %v4640_v45, %s4346_s15 }
 0x6f9   : > { %2276 = vrot.lane.b32.xlu1 %v4638_v43, %s4346_s15 }
 0x6fd   : > { %2274 = vrot.lane.b32.xlu1 %v4621_v63, %s4346_s15 }
 0x72e   : > { %v1811_v55 = vpop.xlane.xlu0 %1810 }
 0x730   : > { %v1814_v61 = vpop.xlane.xlu1 %1813 }
 0x731   : > { %4170 = vrcp.f32 %v1814_v61 }
 0x732   : > { %v1805_v1 = vpop.xlane.xlu0 %1804  ;;  %4172 = vrcp.f32 %v1811_v55 }
 0x733   : > { %4174 = vrcp.f32 %v1805_v1 }
 0x734   : > { %v1885_v6 = vpop.permute.xlu1 %1884 }
 0x735   : > { %3862 = vmatpush3.bf16.msra.mxu1 %v1885_v6 }
 0x736   : > { %v1837_v58 = vpop.permute.xlu0 %1836  ;;  %3873 = vmatprep.subr.bf16.mxu1 %v4343_v56 }
 0x737   : > { %3856 = vmatpush3.bf16.msra.mxu0 %v1837_v58 }
 0x738   : > { %3864 = vmatmul.mubr.msk.bf16.vlgmr.msra.gmra.mrb[48].mxu1 %vm635_vm5, %v1832_v7  ;;  %3867 = vmatprep.subr.bf16.mxu0 %v4343_v56  ;;  %v1933_v10 = vpop.permute.xlu1 %1932 }
 0x739   : > { %3875 = vmatprep.mubr.msk.bf16.mxu1 %vm4344_vm10, %v4343_v56 }
 0x73a   : > { %3858 = vmatmul.mubr.msk.bf16.vlgmr.msra.gmra.mrb[40].mxu0 %vm635_vm5, %v1831_v8  ;;  %v2124_v21 = vpop.permute.xlu0 %2123 }
 0x73b   : > { %3868 = vmatpush3.bf16.msra.mxu0 %v1933_v10  ;;  %3869 = vmatprep.mubr.msk.bf16.mxu0 %vm4344_vm10, %v4343_v56  ;;  %v4171_v12 = vpop.eup %4170  ;;  %v2129_v26 = vsel %vm964_vm1, %v2124_v21, 0 }
 0x73c   : > { %4048 = vmatprep.subr.msk.bf16.mxu0 %vm1446_vm7, %v3568_v9  ;;  %v4173_v15 = vpop.eup %4172  ;;  %v1830_v16 = vmul.f32 %v4171_v12, %v4775_v42 }
 0x73d   : > { %v1829_v17 = vmul.f32 %v4173_v15, %v4769_v39  ;;  %v4175_v20 = vpop.eup %4174 }
 0x73e   : > { %v1827_v24 = vmul.f32 %v4175_v20, %v4771_v40  ;;  %v2175_v35 = vpop.permute.xlu0 %2174 }
 0x73f   : > { %v1834_v19 = vpack.c.bf16 %v1830_v16, %v1829_v17  ;;  %v2180_v37 = vsel %vm964_vm1, %v2175_v35, 0 }
 0x742   : > { %v2173_v39 = vpop.permute.xlu0 %2172 }
 0x769   : > { %v1808_v13 = vpop.xlane.xlu1 %1807 }
 0x76a   : > { %4176 = vrcp.f32 %v1808_v13  ;;  %v2224_v13 = vpop.permute.xlu0 %2223 }
 0x76d   : > { %v1981_v18 = vpop.permute.xlu1 %1980 }
 0x76e   : > { %3874 = vmatpush3.bf16.msra.mxu1 %v1981_v18 }
 0x76f   : > { %3889 = vmatprep.subr.bf16.mxu1 %v4343_v56 }
 0x771   : > { %3876 = vmatmul.mubr.msk.bf16.vlgmr.msra.gmra.mrb[52].mxu1 %vm635_vm5, %v1834_v19  ;;  %v2122_v30 = vpop.permute.xlu1 %2121 }
 0x772   : > { %3891 = vmatprep.mubr.msk.bf16.mxu1 %vm4344_vm10, %v4343_v56 }
 0x774   : > { %v4177_v22 = vpop.eup %4176 }
 0x775   : > { %v1828_v25 = vmul.f32 %v4177_v22, %v4161_v49  ;;  %v2226_v36 = vpop.permute.xlu1 %2225 }
 0x776   : > { %v2231_v54 = vsel %vm964_vm1, %v2226_v36, 0 }
 0x777   : > { %3890 = vmatpush3.bf16.xpose.msra.mxu1 %v2129_v26  ;;  %v1833_v31 = vpack.c.bf16 %v1828_v25, %v1827_v24 }
 0x778   : > { %3895 = vmatprep.subr.bf16.mxu1 %v4343_v56 }
 0x779   : > { %3870 = vmatmul.mubr.msk.bf16.vlgmr.msra.gmra.mrb[44].mxu0 %vm635_vm5, %v1833_v31  ;;  %v2277_v38 = vpop.permute.xlu1 %2276 }
 0x77a   : > { %3880 = vmatpush3.bf16.msra.mxu0 %v2046_v32  ;;  %v2282_v40 = vsel %vm964_vm1, %v2277_v38, 0 }
 0x77b   : > { %3901 = vmatprep.subr.bf16.mxu0 %v4343_v56 }
 0x77d   : > { %v2275_v41 = vpop.permute.xlu1 %2274 }
 0x77e   : > { %3892 = vmatmul.mubr.msk.bf16.vlgmr.msra.gmra.mrb[56].mxu1 %vm964_vm1, %v2122_v30 }
 0x77f   : > { %3896 = vmatpush3.bf16.xpose.msra.mxu1 %v2180_v37  ;;  %3897 = vmatprep.mubr.msk.bf16.mxu1 %vm4344_vm10, %v4343_v56 }
 0x780   : > { %3907 = vmatprep.subr.bf16.mxu1 %v4343_v56 }
 0x786   : > { %3898 = vmatmul.mubr.msk.bf16.vlgmr.msra.gmra.mrb[60].mxu1 %vm964_vm1, %v2173_v39 }
 0x787   : > { %3908 = vmatpush3.bf16.xpose.msra.mxu1 %v2282_v40  ;;  %3909 = vmatprep.mubr.msk.bf16.mxu1 %vm4344_vm10, %v4343_v56 }
 0x788   : > { %3919 = vmatprep.subr.bf16.mxu1 %v4343_v56 }
 0x78e   : > { %3910 = vmatmul.mubr.msk.bf16.vlgmr.msra.gmra.mrb[64].mxu1 %vm964_vm1, %v2275_v41 }
 0x78f   : > { %3921 = vmatprep.mubr.msk.bf16.mxu1 %vm4344_vm10, %v4343_v56 }
 0x80b   : > { %v1924_v42 = vpop.f32.mrb[48].mxu1 }
 0x80c   : > { %v3865_v44 = vpop.f32.mrb[49].mxu1 }
 0x80d   : > { %v1876_v46 = vpop.f32.mrb[40].mxu0  ;;  %v1927_v47 = vpop.f32.mrb[50].mxu1 }
 0x80e   : > { %v2028_v48 = vpack.c.bf16 %v1927_v47, %v1924_v42  ;;  %v3859_v49 = vpop.f32.mrb[41].mxu0  ;;  %v3866_v50 = vpop.f32.mrb[51].mxu1 }
 0x80f   : > { %v1879_v51 = vpop.f32.mrb[42].mxu0 }
 0x810   : > { %v2027_v52 = vpack.c.bf16 %v1879_v51, %v1876_v46  ;;  %v3860_v53 = vpop.f32.mrb[43].mxu0 }
 0x812   : > { %3881 = vmatprep.mubr.msk.bf16.mxu0 %vm964_vm1, %v2027_v52 }
 0x813   : > { %3882 = vmatmul.mubr.msk.bf16.vlgmr.msra.gmra.mrb[28].mxu0 %vm964_vm1, %v2028_v48 }
 0x814   : > { %3902 = vmatpush3.bf16.xpose.msra.mxu0 %v2231_v54 }
 0x815   : > { %3913 = vmatprep.subr.bf16.mxu0 %v4343_v56 }
 0x844   : > { %v2020_v55 = vpop.f32.mrb[52].mxu1 }
 0x845   : > { %v3877_v59 = vpop.f32.mrb[53].mxu1 }
 0x846   : > { %v2023_v60 = vpop.f32.mrb[54].mxu1 }
 0x847   : > { %v2030_v61 = vpack.c.bf16 %v2023_v60, %v2020_v55  ;;  %v3878_v62 = vpop.f32.mrb[55].mxu1 }
 0x84c   : > { %v1972_v0 = vpop.f32.mrb[44].mxu0 }
 0x84d   : > { %v3871_v1 = vpop.f32.mrb[45].mxu0 }
 0x84e   : > { %v1975_v2 = vpop.f32.mrb[46].mxu0 }
 0x84f   : > { %v2029_v4 = vpack.c.bf16 %v1975_v2, %v1972_v0  ;;  %v3872_v5 = vpop.f32.mrb[47].mxu0 }
 0x851   : > { %3885 = vmatprep.mubr.msk.bf16.mxu0 %vm964_vm1, %v2029_v4  ;;  %v2165_v6 = vpop.f32.mrb[56].mxu1 }
 0x852   : > { %v2325_v57 = vmul.f32 0.5, %v2165_v6  ;;  %3886 = vmatmul.mubr.msk.bf16.gmra.mrb[32].mxu0 %vm964_vm1, %v2030_v61  ;;  %v3893_v58 = vpop.f32.mrb[57].mxu1 }
 0x853   : > { %v2168_v7 = vpop.f32.mrb[58].mxu1  ;;  %3903 = vmatprep.mubr.msk.bf16.mxu0 %vm4344_vm10, %v4343_v56 }
 0x854   : > { %v2326_v8 = vmul.f32 0.5, %v2168_v7  ;;  %v3894_v9 = vpop.f32.mrb[59].mxu1  ;;  %v2333_v10 = vsel %vm635_vm5, %v2325_v57, -inf }
 0x855   : > { %2334 = vmax.xlane.f32.xlu0 %v2333_v10 }
 0x856   : > { %v2336_v12 = vsel %vm635_vm5, %v2326_v8, -inf }
 0x857   : > { %2337 = vmax.xlane.f32.xlu1 %v2336_v12 }
 0x859   : > { %v2216_v15 = vpop.f32.mrb[60].mxu1 }
 0x85a   : > { %v2327_v16 = vmul.f32 0.5, %v2216_v15  ;;  %v3899_v17 = vpop.f32.mrb[61].mxu1  ;;  %3904 = vmatmul.mubr.msk.bf16.vlgmr.msra.gmra.mrb[48].mxu0 %vm964_vm1, %v2224_v13 }
 0x85b   : > { %v2219_v18 = vpop.f32.mrb[62].mxu1  ;;  %3915 = vmatprep.mubr.msk.bf16.mxu0 %vm4344_vm10, %v4343_v56 }
 0x85c   : > { %v2328_v19 = vmul.f32 0.5, %v2219_v18  ;;  %v3900_v20 = vpop.f32.mrb[63].mxu1  ;;  %v2339_v21 = vsel %vm635_vm5, %v2327_v16, -inf }
 0x85d   : > { %2340 = vmax.xlane.f32.xlu0 %v2339_v21 }
 0x85e   : > { %v2342_v22 = vsel %vm635_vm5, %v2328_v19, -inf }
 0x861   : > { %2343 = vmax.xlane.f32.xlu0 %v2342_v22  ;;  %v2318_v24 = vpop.f32.mrb[64].mxu1 }
 0x862   : > { %v3911_v25 = vpop.f32.mrb[65].mxu1  ;;  %v2331_v51 = vmul.f32 0.5, %v2318_v24 }
 0x863   : > { %v2321_v26 = vpop.f32.mrb[66].mxu1 }
 0x864   : > { %v3912_v30 = vpop.f32.mrb[67].mxu1  ;;  %v2332_v55 = vmul.f32 0.5, %v2321_v26  ;;  %v2351_v60 = vsel %vm635_vm5, %v2331_v51, -inf }
 0x866   : > { %v2354_v62 = vsel %vm635_vm5, %v2332_v55, -inf }
 0x8e2   : > { %v2335_v31 = vpop.xlane.xlu0 %2334 }
 0x8e3   : > { %v2357_v36 = vsub.f32 %v2325_v57, %v2335_v31 }
 0x8e4   : > { %v2338_v35 = vpop.xlane.xlu1 %2337 }
 0x8e5   : > { %v2358_v37 = vsub.f32 %v2326_v8, %v2338_v35  ;;  %v2365_v39 = vmul.f32 1.442695, %v2357_v36 }
 0x8e7   : > { %v2367_v41 = vmul.f32 1.442695, %v2358_v37  ;;  %4178 = vpow2.f32 %v2365_v39 }
 0x8e9   : > { %4180 = vpow2.f32 %v2367_v41 }
 0x8ea   : > { %v2341_v32 = vpop.xlane.xlu0 %2340 }
 0x8eb   : > { %v2359_v40 = vsub.f32 %v2327_v16, %v2341_v32 }
 0x8ed   : > { %v2369_v44 = vmul.f32 1.442695, %v2359_v40 }
 0x8ee   : > { %v2344_v38 = vpop.xlane.xlu0 %2343 }
 0x8ef   : > { %v2360_v42 = vsub.f32 %v2328_v19, %v2344_v38  ;;  %4182 = vpow2.f32 %v2369_v44 }
 0x8f1   : > { %v2371_v46 = vmul.f32 1.442695, %v2360_v42  ;;  %v4864_v61 = vpop.eup %4178 }
 0x8f2   : > { %v2381_v1 = vsel %vm635_vm5, %v4864_v61, 0.0 }
 0x8f3   : > { %4184 = vpow2.f32 %v2371_v46  ;;  %v4867_v0 = vpop.eup %4180 }
 0x8f4   : > { %v2384_v4 = vsel %vm635_vm5, %v4867_v0, 0.0 }
 0x8f9   : > { %v4871_v2 = vpop.eup %4182 }
 0x8fa   : > { %v2387_v6 = vsel %vm635_vm5, %v4871_v2, 0.0 }
 0x8fd   : > { %v4185_v5 = vpop.eup %4184 }
 0x8fe   : > { %v2390_v57 = vsel %vm635_vm5, %v4185_v5, 0.0 }
 0x92d   : > { %v2267_v47 = vpop.f32.mrb[48].mxu0 }
 0x92e   : > { %v2329_v48 = vmul.f32 0.5, %v2267_v47  ;;  %v3905_v49 = vpop.f32.mrb[49].mxu0  ;;  %v3581_v47 = vld [vmem:[%s5110_s9 + $0x4] sm:$0x3] }
 0x92f   : > { %v2270_v50 = vpop.f32.mrb[50].mxu0 }
 0x930   : > { %v2330_v52 = vmul.f32 0.5, %v2270_v50  ;;  %v3906_v53 = vpop.f32.mrb[51].mxu0  ;;  %v2345_v54 = vsel %vm635_vm5, %v2329_v48, -inf }
 0x931   : > { %2346 = vmax.xlane.f32.xlu0 %v2345_v54 }
 0x932   : > { %v2348_v59 = vsel %vm635_vm5, %v2330_v52, -inf }
 0x933   : > { %2349 = vmax.xlane.f32.xlu1 %v2348_v59 }
 0x935   : > { %2352 = vmax.xlane.f32.xlu0 %v2351_v60 }
 0x937   : > { %2355 = vmax.xlane.f32.xlu1 %v2354_v62 }
 0x939   : > { %2382 = vadd.xlane.f32.xlu0 %v2381_v1 }
 0x93b   : > { %2385 = vadd.xlane.f32.xlu1 %v2384_v4 }
 0x93d   : > { %2388 = vadd.xlane.f32.xlu0 %v2387_v6 }
 0x93f   : > { %2391 = vadd.xlane.f32.xlu1 %v2390_v57 }
 0x9be   : > { %v2347_v58 = vpop.xlane.xlu0 %2346 }
 0x9bf   : > { %v2361_v7 = vsub.f32 %v2329_v48, %v2347_v58 }
 0x9c0   : > { %v2350_v8 = vpop.xlane.xlu1 %2349 }
 0x9c1   : > { %v2373_v12 = vmul.f32 1.442695, %v2361_v7  ;;  %v2362_v25 = vsub.f32 %v2330_v52, %v2350_v8 }
 0x9c2   : > { %v2353_v9 = vpop.xlane.xlu0 %2352 }
 0x9c3   : > { %v2363_v10 = vsub.f32 %v2331_v51, %v2353_v9  ;;  %v2375_v26 = vmul.f32 1.442695, %v2362_v25 }
 0x9c4   : > { %v2356_v13 = vpop.xlane.xlu1 %2355 }
 0x9c5   : > { %v2377_v15 = vmul.f32 1.442695, %v2363_v10  ;;  %v2364_v16 = vsub.f32 %v2332_v55, %v2356_v13 }
 0x9c7   : > { %4186 = vpow2.f32 %v2377_v15  ;;  %v2379_v17 = vmul.f32 1.442695, %v2364_v16 }
 0x9c8   : > { %4188 = vpow2.f32 %v2373_v12 }
 0x9c9   : > { %4190 = vpow2.f32 %v2379_v17 }
 0x9ca   : > { %4192 = vpow2.f32 %v2375_v26 }
 0x9d1   : > { %v4878_v18 = vpop.eup %4186 }
 0x9d2   : > { %v4880_v19 = vpop.eup %4188  ;;  %v2399_v20 = vsel %vm635_vm5, %v4878_v18, 0.0 }
 0x9d3   : > { %v4884_v21 = vpop.eup %4190  ;;  %2400 = vadd.xlane.f32.xlu0 %v2399_v20  ;;  %v2393_v24 = vsel %vm635_vm5, %v4880_v19, 0.0 }
 0x9d4   : > { %v2402_v22 = vsel %vm635_vm5, %v4884_v21, 0.0  ;;  %v4193_v30 = vpop.eup %4192 }
 0x9d5   : > { %2403 = vadd.xlane.f32.xlu1 %v2402_v22  ;;  %v2396_v31 = vsel %vm635_vm5, %v4193_v30, 0.0 }
 0x9d7   : > { %2394 = vadd.xlane.f32.xlu0 %v2393_v24 }
 0x9e6   : > { %2472 = vrot.lane.b32.xlu1 %v4603_v28, %s4346_s15 }
 0x9ea   : > { %2519 = vrot.lane.b32.xlu1 %v4629_v14, %s4346_s15 }
 0x9ed   : > { %2425 = vrot.lane.b32.xlu0 %v4607_v34, %s4346_s15 }
 0x9f1   : > { %2709 = vrot.lane.b32.xlu0 %v4633_v29, %s4347_s23 }
 0x9f5   : > { %2760 = vrot.lane.b32.xlu0 %v4631_v23, %s4347_s23 }
 0x9f9   : > { %2758 = vrot.lane.b32.xlu0 %v4601_v27, %s4347_s23  ;;  %v2386_v27 = vpop.xlane.xlu1 %2385 }
 0x9fd   : > { %2809 = vrot.lane.b32.xlu0 %v4627_v11, %s4347_s23  ;;  %v2383_v11 = vpop.xlane.xlu0 %2382  ;;  %v2392_v23 = vpop.xlane.xlu1 %2391 }
 0x9fe   : > { %4194 = vrcp.f32 %v2392_v23 }
 0x9ff   : > { %4196 = vrcp.f32 %v2386_v27 }
 0xa01   : > { %v2389_v29 = vpop.xlane.xlu0 %2388 }
 0xa02   : > { %4198 = vrcp.f32 %v2389_v29 }
 0xa03   : > { %4200 = vrcp.f32 %v2383_v11 }
 0xa08   : > { %v4195_v35 = vpop.eup %4194 }
 0xa0e   : > { %2397 = vadd.xlane.f32.xlu1 %v2396_v31 }
 0xa1f   : > { %2566 = vrot.lane.b32.xlu1 %v4623_v3, %s4346_s15  ;;  %s4348_s15 = smov [#allocation5]  }
 0xa20   : > { %s4276_s19 = sshll.u32 %s4348_s15, 4  ;;  %s4277_s19 = int_to_ptr.vmem [resolvable:$false] %s4276_s19 }
 0xa21   : > { %s4278_s24 = scalar_lea.vmem %s4277_s19, 2048  ;;  %p4279_p8 = scmp.lt.s32.totalorder %s5051_s27, %s4277_s19 }
 0xa22   : > { %p4280_p10 = scmp.lt.s32.totalorder %s4278_s24, %s4272_s18 }
 0xa23   : > { %2707 = vrot.lane.b32.xlu1 %v4605_v33, %s4347_s23  ;;  %v4197_v33 = vpop.eup %4196 }
 0xa24   : > { %v4199_v37 = vpop.eup %4198  ;;  %p4281_p0 = por %p4280_p10, %p4279_p8 }
 0xa25   : > { %v4201_v39 = vpop.eup %4200 }
 0xa26   : > { %v2413_v41 = vmul.f32 %v4201_v39, %v4864_v61  ;;  %p4282_p2 = pnand %p4281_p0, %p4275_p13 }
 0xa27   : > { %2811 = vrot.lane.b32.xlu1 %v4640_v45, %s4347_s23  ;;  %v2416_v45 = vmul.f32 %v4195_v35, %v4185_v5  ;;  %v2632_v5 = vsel %vm1446_vm7, %v3581_v47, 0 }
 0xa2b   : > { %2862 = vrot.lane.b32.xlu1 %v4638_v43, %s4347_s23  ;;  %v2414_v43 = vmul.f32 %v4197_v33, %v4867_v0 }
 0xa2d   : > { %v2421_v46 = vpack.c.bf16 %v2414_v43, %v2413_v41 }
 0xa2f   : > { %2860 = vrot.lane.b32.xlu1 %v4621_v63, %s4347_s23  ;;  %v2415_v63 = vmul.f32 %v4199_v37, %v4871_v2 }
 0xa31   : > { %v2422_v44 = vpack.c.bf16 %v2416_v45, %v2415_v63 }
 0xa60   : > { %v2401_v32 = vpop.xlane.xlu0 %2400 }
 0xa62   : > { %v2404_v36 = vpop.xlane.xlu1 %2403 }
 0xa63   : > { %4202 = vrcp.f32 %v2404_v36 }
 0xa64   : > { %v2395_v38 = vpop.xlane.xlu0 %2394  ;;  %4204 = vrcp.f32 %v2401_v32 }
 0xa65   : > { %4206 = vrcp.f32 %v2395_v38 }
 0xa66   : > { %v2473_v40 = vpop.permute.xlu1 %2472 }
 0xa67   : > { %3920 = vmatpush3.bf16.msra.mxu1 %v2473_v40 }
 0xa68   : > { %v2426_v42 = vpop.permute.xlu0 %2425  ;;  %3931 = vmatprep.subr.bf16.mxu1 %v4343_v56 }
 0xa69   : > { %3914 = vmatpush3.bf16.msra.mxu0 %v2426_v42 }
 0xa6a   : > { %3922 = vmatmul.mubr.msk.bf16.vlgmr.msra.gmra.mrb[68].mxu1 %vm635_vm5, %v2422_v44  ;;  %3925 = vmatprep.subr.bf16.mxu0 %v4343_v56  ;;  %v2520_v48 = vpop.permute.xlu1 %2519 }
 0xa6b   : > { %3933 = vmatprep.mubr.msk.bf16.mxu1 %vm4344_vm10, %v4343_v56 }
 0xa6c   : > { %3916 = vmatmul.mubr.msk.bf16.vlgmr.msra.gmra.mrb[52].mxu0 %vm635_vm5, %v2421_v46  ;;  %v2710_v60 = vpop.permute.xlu0 %2709 }
 0xa6d   : > { %3926 = vmatpush3.bf16.msra.mxu0 %v2520_v48  ;;  %3927 = vmatprep.mubr.msk.bf16.mxu0 %vm4344_vm10, %v4343_v56  ;;  %v4203_v49 = vpop.eup %4202  ;;  %v2715_v1 = vsel %vm964_vm1, %v2710_v60, 0 }
 0xa6e   : > { %4049 = vmatprep.subr.msk.bf16.mxu0 %vm1446_vm7, %v3581_v47  ;;  %v4205_v51 = vpop.eup %4204  ;;  %v2420_v52 = vmul.f32 %v4203_v49, %v4884_v21 }
 0xa6f   : > { %v2419_v53 = vmul.f32 %v4205_v51, %v4878_v18  ;;  %v4207_v59 = vpop.eup %4206 }
 0xa70   : > { %v2417_v62 = vmul.f32 %v4207_v59, %v4880_v19  ;;  %v2761_v6 = vpop.permute.xlu0 %2760 }
 0xa71   : > { %v2424_v55 = vpack.c.bf16 %v2420_v52, %v2419_v53  ;;  %v2766_v58 = vsel %vm964_vm1, %v2761_v6, 0 }
 0xa74   : > { %v2759_v8 = vpop.permute.xlu0 %2758 }
 0xa78   : > { %v2810_v40 = vpop.permute.xlu0 %2809 }
 0xa9b   : > { %v2398_v50 = vpop.xlane.xlu1 %2397 }
 0xa9c   : > { %4208 = vrcp.f32 %v2398_v50 }
 0xa9f   : > { %v2567_v54 = vpop.permute.xlu1 %2566 }
 0xaa0   : > { %3932 = vmatpush3.bf16.msra.mxu1 %v2567_v54 }
 0xaa1   : > { %3947 = vmatprep.subr.bf16.mxu1 %v4343_v56 }
 0xaa3   : > { %3934 = vmatmul.mubr.msk.bf16.vlgmr.msra.gmra.mrb[72].mxu1 %vm635_vm5, %v2424_v55  ;;  %v2708_v2 = vpop.permute.xlu1 %2707 }
 0xaa4   : > { %3949 = vmatprep.mubr.msk.bf16.mxu1 %vm4344_vm10, %v4343_v56 }
 0xaa6   : > { %v4209_v61 = vpop.eup %4208 }
 0xaa7   : > { %v2418_v0 = vmul.f32 %v4209_v61, %v4193_v30  ;;  %v2812_v57 = vpop.permute.xlu1 %2811 }
 0xaa8   : > { %v2817_v24 = vsel %vm964_vm1, %v2812_v57, 0 }
 0xaa9   : > { %3948 = vmatpush3.bf16.xpose.msra.mxu1 %v2715_v1  ;;  %v2423_v4 = vpack.c.bf16 %v2418_v0, %v2417_v62 }
 0xaaa   : > { %3953 = vmatprep.subr.bf16.mxu1 %v4343_v56 }
 0xaab   : > { %3928 = vmatmul.mubr.msk.bf16.vlgmr.msra.gmra.mrb[56].mxu0 %vm635_vm5, %v2423_v4  ;;  %v2863_v7 = vpop.permute.xlu1 %2862 }
 0xaac   : > { %3938 = vmatpush3.bf16.msra.mxu0 %v2632_v5  ;;  %v2868_v9 = vsel %vm964_vm1, %v2863_v7, 0 }
 0xaad   : > { %3959 = vmatprep.subr.bf16.mxu0 %v4343_v56 }
 0xaaf   : > { %v2861_v10 = vpop.permute.xlu1 %2860 }
 0xab0   : > { %3950 = vmatmul.mubr.msk.bf16.vlgmr.msra.gmra.mrb[76].mxu1 %vm964_vm1, %v2708_v2 }
 0xab1   : > { %3954 = vmatpush3.bf16.xpose.msra.mxu1 %v2766_v58  ;;  %3955 = vmatprep.mubr.msk.bf16.mxu1 %vm4344_vm10, %v4343_v56 }
 0xab2   : > { %3965 = vmatprep.subr.bf16.mxu1 %v4343_v56 }
 0xab8   : > { %3956 = vmatmul.mubr.msk.bf16.vlgmr.msra.gmra.mrb[80].mxu1 %vm964_vm1, %v2759_v8 }
 0xab9   : > { %3966 = vmatpush3.bf16.xpose.msra.mxu1 %v2868_v9  ;;  %3967 = vmatprep.mubr.msk.bf16.mxu1 %vm4344_vm10, %v4343_v56 }
 0xaba   : > { %3977 = vmatprep.subr.bf16.mxu1 %v4343_v56 }
 0xac0   : > { %3968 = vmatmul.mubr.msk.bf16.vlgmr.msra.gmra.mrb[84].mxu1 %vm964_vm1, %v2861_v10 }
 0xac1   : > { %3979 = vmatprep.mubr.msk.bf16.mxu1 %vm4344_vm10, %v4343_v56 }
 0xb3d   : > { %v2512_v12 = vpop.f32.mrb[68].mxu1 }
 0xb3e   : > { %v3923_v13 = vpop.f32.mrb[69].mxu1 }
 0xb3f   : > { %v2465_v15 = vpop.f32.mrb[52].mxu0  ;;  %v2515_v16 = vpop.f32.mrb[70].mxu1 }
 0xb40   : > { %v2614_v17 = vpack.c.bf16 %v2515_v16, %v2512_v12  ;;  %v3917_v18 = vpop.f32.mrb[53].mxu0  ;;  %v3924_v19 = vpop.f32.mrb[71].mxu1 }
 0xb41   : > { %v2468_v20 = vpop.f32.mrb[54].mxu0 }
 0xb42   : > { %v2613_v21 = vpack.c.bf16 %v2468_v20, %v2465_v15  ;;  %v3918_v22 = vpop.f32.mrb[55].mxu0 }
 0xb44   : > { %3939 = vmatprep.mubr.msk.bf16.mxu0 %vm964_vm1, %v2613_v21 }
 0xb45   : > { %3940 = vmatmul.mubr.msk.bf16.vlgmr.msra.gmra.mrb[28].mxu0 %vm964_vm1, %v2614_v17 }
 0xb46   : > { %3960 = vmatpush3.bf16.xpose.msra.mxu0 %v2817_v24 }
 0xb47   : > { %3971 = vmatprep.subr.bf16.mxu0 %v4343_v56 }
 0xb76   : > { %v2606_v25 = vpop.f32.mrb[72].mxu1 }
 0xb77   : > { %v3935_v26 = vpop.f32.mrb[73].mxu1 }
 0xb78   : > { %v2609_v30 = vpop.f32.mrb[74].mxu1 }
 0xb79   : > { %v2616_v31 = vpack.c.bf16 %v2609_v30, %v2606_v25  ;;  %v3936_v27 = vpop.f32.mrb[75].mxu1 }
 0xb7e   : > { %v2559_v11 = vpop.f32.mrb[56].mxu0 }
 0xb7f   : > { %v3929_v23 = vpop.f32.mrb[57].mxu0 }
 0xb80   : > { %v2562_v29 = vpop.f32.mrb[58].mxu0 }
 0xb81   : > { %v2615_v32 = vpack.c.bf16 %v2562_v29, %v2559_v11  ;;  %v3930_v35 = vpop.f32.mrb[59].mxu0 }
 0xb83   : > { %3943 = vmatprep.mubr.msk.bf16.mxu0 %vm964_vm1, %v2615_v32  ;;  %v2751_v33 = vpop.f32.mrb[76].mxu1 }
 0xb84   : > { %v2911_v36 = vmul.f32 0.5, %v2751_v33  ;;  %3944 = vmatmul.mubr.msk.bf16.gmra.mrb[32].mxu0 %vm964_vm1, %v2616_v31  ;;  %v3951_v37 = vpop.f32.mrb[77].mxu1 }
 0xb85   : > { %v2754_v45 = vpop.f32.mrb[78].mxu1  ;;  %3961 = vmatprep.mubr.msk.bf16.mxu0 %vm4344_vm10, %v4343_v56 }
 0xb86   : > { %v2912_v38 = vmul.f32 0.5, %v2754_v45  ;;  %v3952_v39 = vpop.f32.mrb[79].mxu1  ;;  %v2919_v43 = vsel %vm635_vm5, %v2911_v36, -inf }
 0xb87   : > { %2920 = vmax.xlane.f32.xlu0 %v2919_v43 }
 0xb88   : > { %v2922_v63 = vsel %vm635_vm5, %v2912_v38, -inf }
 0xb89   : > { %2923 = vmax.xlane.f32.xlu1 %v2922_v63 }
 0xb8b   : > { %v2802_v41 = vpop.f32.mrb[80].mxu1 }
 0xb8c   : > { %v2913_v42 = vmul.f32 0.5, %v2802_v41  ;;  %v3957_v44 = vpop.f32.mrb[81].mxu1  ;;  %3962 = vmatmul.mubr.msk.bf16.vlgmr.msra.gmra.mrb[60].mxu0 %vm964_vm1, %v2810_v40 }
 0xb8d   : > { %v2805_v46 = vpop.f32.mrb[82].mxu1  ;;  %3973 = vmatprep.mubr.msk.bf16.mxu0 %vm4344_vm10, %v4343_v56 }
 0xb8e   : > { %v2914_v47 = vmul.f32 0.5, %v2805_v46  ;;  %v3958_v48 = vpop.f32.mrb[83].mxu1  ;;  %v2925_v49 = vsel %vm635_vm5, %v2913_v42, -inf }
 0xb8f   : > { %2926 = vmax.xlane.f32.xlu0 %v2925_v49 }
 0xb90   : > { %v2928_v50 = vsel %vm635_vm5, %v2914_v47, -inf }
 0xb93   : > { %2929 = vmax.xlane.f32.xlu0 %v2928_v50  ;;  %v2904_v51 = vpop.f32.mrb[84].mxu1 }
 0xb94   : > { %v3969_v52 = vpop.f32.mrb[85].mxu1  ;;  %v2917_v10 = vmul.f32 0.5, %v2904_v51 }
 0xb95   : > { %v2907_v53 = vpop.f32.mrb[86].mxu1 }
 0xb96   : > { %v3970_v54 = vpop.f32.mrb[87].mxu1  ;;  %v2918_v16 = vmul.f32 0.5, %v2907_v53  ;;  %v2937_v18 = vsel %vm635_vm5, %v2917_v10, -inf }
 0xb98   : > { %v2940_v20 = vsel %vm635_vm5, %v2918_v16, -inf }
 0xc14   : > { %v2921_v55 = vpop.xlane.xlu0 %2920 }
 0xc15   : > { %v2943_v61 = vsub.f32 %v2911_v36, %v2921_v55 }
 0xc16   : > { %v2924_v60 = vpop.xlane.xlu1 %2923 }
 0xc17   : > { %v2944_v62 = vsub.f32 %v2912_v38, %v2924_v60  ;;  %v2951_v1 = vmul.f32 1.442695, %v2943_v61 }
 0xc19   : > { %v2953_v4 = vmul.f32 1.442695, %v2944_v62  ;;  %4210 = vpow2.f32 %v2951_v1 }
 0xc1b   : > { %4212 = vpow2.f32 %v2953_v4 }
 0xc1c   : > { %v2927_v59 = vpop.xlane.xlu0 %2926 }
 0xc1d   : > { %v2945_v2 = vsub.f32 %v2913_v42, %v2927_v59 }
 0xc1f   : > { %v2955_v6 = vmul.f32 1.442695, %v2945_v2 }
 0xc20   : > { %v2930_v0 = vpop.xlane.xlu0 %2929 }
 0xc21   : > { %v2946_v5 = vsub.f32 %v2914_v47, %v2930_v0  ;;  %4214 = vpow2.f32 %v2955_v6 }
 0xc23   : > { %v2957_v57 = vmul.f32 1.442695, %v2946_v5  ;;  %v4973_v19 = vpop.eup %4210 }
 0xc24   : > { %v2967_v22 = vsel %vm635_vm5, %v4973_v19, 0.0 }
 0xc25   : > { %4216 = vpow2.f32 %v2957_v57  ;;  %v4213_v21 = vpop.eup %4212 }
 0xc26   : > { %v2970_v25 = vsel %vm635_vm5, %v4213_v21, 0.0 }
 0xc2b   : > { %v4215_v24 = vpop.eup %4214 }
 0xc2c   : > { %v2973_v30 = vsel %vm635_vm5, %v4215_v24, 0.0 }
 0xc2f   : > { %v4217_v26 = vpop.eup %4216 }
 0xc30   : > { %v2976_v31 = vsel %vm635_vm5, %v4217_v26, 0.0 }
 0xc5f   : > { %v2853_v58 = vpop.f32.mrb[60].mxu0 }
 0xc60   : > { %v2915_v7 = vmul.f32 0.5, %v2853_v58  ;;  %v3963_v8 = vpop.f32.mrb[61].mxu0 }
 0xc61   : > { %v2856_v9 = vpop.f32.mrb[62].mxu0 }
 0xc62   : > { %v2916_v12 = vmul.f32 0.5, %v2856_v9  ;;  %v3964_v13 = vpop.f32.mrb[63].mxu0  ;;  %v2931_v15 = vsel %vm635_vm5, %v2915_v7, -inf }
 0xc63   : > { %2932 = vmax.xlane.f32.xlu0 %v2931_v15 }
 0xc64   : > { %v2934_v17 = vsel %vm635_vm5, %v2916_v12, -inf }
 0xc65   : > { %2935 = vmax.xlane.f32.xlu1 %v2934_v17 }
 0xc67   : > { %2938 = vmax.xlane.f32.xlu0 %v2937_v18 }
 0xc69   : > { %2941 = vmax.xlane.f32.xlu1 %v2940_v20 }
 0xc6b   : > { %2968 = vadd.xlane.f32.xlu0 %v2967_v22 }
 0xc6d   : > { %2971 = vadd.xlane.f32.xlu1 %v2970_v25 }
 0xc6f   : > { %2974 = vadd.xlane.f32.xlu0 %v2973_v30 }
 0xc71   : > { %2977 = vadd.xlane.f32.xlu1 %v2976_v31 }
 0xcf0   : > { %v2933_v27 = vpop.xlane.xlu0 %2932 }
 0xcf1   : > { %v2947_v11 = vsub.f32 %v2915_v7, %v2933_v27 }
 0xcf2   : > { %v2936_v23 = vpop.xlane.xlu1 %2935 }
 0xcf3   : > { %v2959_v35 = vmul.f32 1.442695, %v2947_v11  ;;  %v2948_v42 = vsub.f32 %v2916_v12, %v2936_v23 }
 0xcf4   : > { %v2939_v29 = vpop.xlane.xlu0 %2938 }
 0xcf5   : > { %v2949_v32 = vsub.f32 %v2917_v10, %v2939_v29  ;;  %v2961_v44 = vmul.f32 1.442695, %v2948_v42 }
 0xcf6   : > { %v2942_v33 = vpop.xlane.xlu1 %2941 }
 0xcf7   : > { %v2963_v36 = vmul.f32 1.442695, %v2949_v32  ;;  %v2950_v37 = vsub.f32 %v2918_v16, %v2942_v33  ;;  %v3594_v16 = vld [vmem:[%s5110_s9 + $0x6] sm:$0x3] }
 0xcf8   : > { %v2969_v49 = vpop.xlane.xlu0 %2968  ;;  %v3218_v17 = vsel %vm1446_vm7, %v3594_v16, 0 }
 0xcf9   : > { %4218 = vpow2.f32 %v2963_v36  ;;  %v2965_v45 = vmul.f32 1.442695, %v2950_v37 }
 0xcfa   : > { %4220 = vpow2.f32 %v2959_v35  ;;  %v2972_v48 = vpop.xlane.xlu1 %2971 }
 0xcfb   : > { %4222 = vpow2.f32 %v2965_v45 }
 0xcfc   : > { %4224 = vpow2.f32 %v2961_v44 }
 0xcfe   : > { %v2978_v50 = vpop.xlane.xlu1 %2977 }
 0xcff   : > { %4226 = vrcp.f32 %v2978_v50 }
 0xd00   : > { %4228 = vrcp.f32 %v2972_v48 }
 0xd03   : > { %v4219_v38 = vpop.eup %4218 }
 0xd04   : > { %v4981_v39 = vpop.eup %4220  ;;  %v2985_v43 = vsel %vm635_vm5, %v4219_v38, 0.0 }
 0xd05   : > { %v4223_v63 = vpop.eup %4222  ;;  %2986 = vadd.xlane.f32.xlu0 %v2985_v43  ;;  %v2979_v41 = vsel %vm635_vm5, %v4981_v39, 0.0 }
 0xd06   : > { %v2988_v40 = vsel %vm635_vm5, %v4223_v63, 0.0  ;;  %v4225_v46 = vpop.eup %4224 }
 0xd07   : > { %2989 = vadd.xlane.f32.xlu1 %v2988_v40  ;;  %v2982_v47 = vsel %vm635_vm5, %v4225_v46, 0.0 }
 0xd09   : > { %2980 = vadd.xlane.f32.xlu0 %v2979_v41 }
 0xd18   : > { %3058 = vrot.lane.b32.xlu1 %v4603_v28, %s4347_s23  ;;  %v2975_v28 = vpop.xlane.xlu0 %2974 }
 0xd19   : > { %4230 = vrcp.f32 %v2975_v28 }
 0xd1a   : > { %4232 = vrcp.f32 %v2969_v49 }
 0xd1c   : > { %3105 = vrot.lane.b32.xlu1 %v4629_v14, %s4347_s23 }
 0xd1f   : > { %3011 = vrot.lane.b32.xlu0 %v4607_v34, %s4347_s23  ;;  %v4227_v34 = vpop.eup %4226 }
 0xd20   : > { %v4229_v51 = vpop.eup %4228  ;;  %v3002_v54 = vmul.f32 %v4227_v34, %v4217_v26 }
 0xd21   : > { %v3000_v60 = vmul.f32 %v4229_v51, %v4213_v21 }
 0xd23   : > { %v4231_v53 = vpop.eup %4230 }
 0xd24   : > { %v4233_v59 = vpop.eup %4232  ;;  %v3001_v61 = vmul.f32 %v4231_v53, %v4215_v24 }
 0xd26   : > { %v3008_v1 = vpack.c.bf16 %v3002_v54, %v3001_v61 }
 0xd40   : > { %2983 = vadd.xlane.f32.xlu1 %v2982_v47 }
 0xd51   : > { %3152 = vrot.lane.b32.xlu1 %v4623_v3, %s4347_s23  ;;  %v2999_v3 = vmul.f32 %v4233_v59, %v4973_v19 }
 0xd53   : > { %v3007_v2 = vpack.c.bf16 %v3000_v60, %v2999_v3  ;;  %v3599_v60 = vld [vmem:[%s5113_s12] ss:$0 sm:$0xff] }
 0xd92   : > { %v2987_v14 = vpop.xlane.xlu0 %2986 }
 0xd94   : > { %v2990_v52 = vpop.xlane.xlu1 %2989 }
 0xd95   : > { %4234 = vrcp.f32 %v2990_v52 }
 0xd96   : > { %v2981_v55 = vpop.xlane.xlu0 %2980  ;;  %4236 = vrcp.f32 %v2987_v14 }
 0xd97   : > { %4238 = vrcp.f32 %v2981_v55 }
 0xd98   : > { %v3059_v62 = vpop.permute.xlu1 %3058 }
 0xd99   : > { %3978 = vmatpush3.bf16.msra.mxu1 %v3059_v62 }
 0xd9a   : > { %v3012_v0 = vpop.permute.xlu0 %3011  ;;  %3989 = vmatprep.subr.bf16.mxu1 %v4343_v56 }
 0xd9b   : > { %3972 = vmatpush3.bf16.msra.mxu0 %v3012_v0 }
 0xd9c   : > { %3980 = vmatmul.mubr.msk.bf16.vlgmr.msra.gmra.mrb[88].mxu1 %vm635_vm5, %v3008_v1  ;;  %3983 = vmatprep.subr.bf16.mxu0 %v4343_v56  ;;  %v3106_v4 = vpop.permute.xlu1 %3105 }
 0xd9d   : > { %3991 = vmatprep.mubr.msk.bf16.mxu1 %vm4344_vm10, %v4343_v56 }
 0xd9e   : > { %3974 = vmatmul.mubr.msk.bf16.vlgmr.msra.gmra.mrb[64].mxu0 %vm635_vm5, %v3007_v2 }
 0xd9f   : > { %3984 = vmatpush3.bf16.msra.mxu0 %v3106_v4  ;;  %3985 = vmatprep.mubr.msk.bf16.mxu0 %vm4344_vm10, %v4343_v56  ;;  %v4235_v5 = vpop.eup %4234 }
 0xda0   : > { %v4237_v57 = vpop.eup %4236  ;;  %v3006_v58 = vmul.f32 %v4235_v5, %v4223_v63  ;;  %4050 = vmatprep.subr.msk.bf16.mxu0 %vm1446_vm7, %v3594_v16 }
 0xda1   : > { %v3005_v7 = vmul.f32 %v4237_v57, %v4219_v38  ;;  %v4239_v10 = vpop.eup %4238  ;;  %v4113_v38 = vld [vmem:[%s5112_s11] sm:$0xff]  }
 0xda2   : > { %v3003_v13 = vmul.f32 %v4239_v10, %v4981_v39  ;;  %v3547_v39 = vld [vmem:[%s5111_s10] ss:$0 sm:$0xff] }
 0xda3   : > { %v3010_v9 = vpack.c.bf16 %v3006_v58, %v3005_v7 }
 0xdcd   : > { %v2984_v6 = vpop.xlane.xlu1 %2983 }
 0xdce   : > { %4240 = vrcp.f32 %v2984_v6 }
 0xdd1   : > { %v3153_v8 = vpop.permute.xlu1 %3152 }
 0xdd2   : > { %3990 = vmatpush3.bf16.msra.mxu1 %v3153_v8 }
 0xdd3   : > { %4005 = vmatprep.subr.bf16.mxu1 %v4113_v38 }
 0xdd5   : > { %3992 = vmatmul.mubr.msk.bf16.vlgmr.msra.gmra.mrb[92].mxu1 %vm635_vm5, %v3010_v9 }
 0xdd6   : > { %4006 = vmatpush3.bf16.msra.mxu1 %v4113_v38 }
 0xdd8   : > { %v4241_v12 = vpop.eup %4240 }
 0xdd9   : > { %v3004_v15 = vmul.f32 %v4241_v12, %v4225_v46 }
 0xddb   : > { %v3009_v56 = vpack.c.bf16 %v3004_v15, %v3003_v13 }
 0xddd   : > { %3986 = vmatmul.mubr.msk.bf16.vlgmr.msra.gmra.mrb[68].mxu0 %vm635_vm5, %v3009_v56 }
 0xdde   : > { %3996 = vmatpush3.bf16.msra.mxu0 %v3218_v17 }
 0xe6f   : > { %v3098_v18 = vpop.f32.mrb[88].mxu1 }
 0xe70   : > { %v3981_v19 = vpop.f32.mrb[89].mxu1 }
 0xe71   : > { %v3051_v20 = vpop.f32.mrb[64].mxu0  ;;  %v3101_v21 = vpop.f32.mrb[90].mxu1 }
 0xe72   : > { %v3200_v22 = vpack.c.bf16 %v3101_v21, %v3098_v18  ;;  %v3975_v24 = vpop.f32.mrb[65].mxu0  ;;  %v3982_v25 = vpop.f32.mrb[91].mxu1 }
 0xe73   : > { %v3054_v26 = vpop.f32.mrb[66].mxu0 }
 0xe74   : > { %v3199_v30 = vpack.c.bf16 %v3054_v26, %v3051_v20  ;;  %v3976_v31 = vpop.f32.mrb[67].mxu0 }
 0xe76   : > { %3997 = vmatprep.mubr.msk.bf16.mxu0 %vm964_vm1, %v3199_v30 }
 0xe77   : > { %3998 = vmatmul.mubr.msk.bf16.vlgmr.msra.gmra.mrb[28].mxu0 %vm964_vm1, %v3200_v22 }
 0xea8   : > { %v3192_v27 = vpop.f32.mrb[92].mxu1 }
 0xea9   : > { %v3993_v11 = vpop.f32.mrb[93].mxu1 }
 0xeaa   : > { %v3195_v23 = vpop.f32.mrb[94].mxu1 }
 0xeab   : > { %v3202_v29 = vpack.c.bf16 %v3195_v23, %v3192_v27  ;;  %v3994_v32 = vpop.f32.mrb[95].mxu1 }
 0xeb0   : > { %v3145_v35 = vpop.f32.mrb[68].mxu0 }
 0xeb1   : > { %v3987_v33 = vpop.f32.mrb[69].mxu0 }
 0xeb2   : > { %v3148_v36 = vpop.f32.mrb[70].mxu0 }
 0xeb3   : > { %v3201_v37 = vpack.c.bf16 %v3148_v36, %v3145_v35  ;;  %v3988_v45 = vpop.f32.mrb[71].mxu0 }
 0xeb5   : > { %4001 = vmatprep.mubr.msk.bf16.mxu0 %vm964_vm1, %v3201_v37 }
 0xeb6   : > { %4002 = vmatmul.mubr.msk.bf16.gmra.mrb[32].mxu0 %vm964_vm1, %v3202_v29 }
 0xf4a   : > { %v3999_v43 = vpop.f32.mrb[28].mxu0 }
 0xf4b   : > { %v3254_v63 = vpop.f32.mrb[29].mxu0  ;;  %v4015_v41 = vadd.f32 %v3999_v43, %v3547_v39 }
 0xf4c   : > { %v4000_v40 = vpop.f32.mrb[30].mxu0  ;;  %v4016_v46 = vadd.f32 %v3547_v39, %v3254_v63 }
 0xf4d   : > { %v4017_v42 = vadd.f32 %v4000_v40, %v3547_v39  ;;  %v3257_v44 = vpop.f32.mrb[31].mxu0 }
 0xf4e   : > { %v4018_v47 = vadd.f32 %v3547_v39, %v3257_v44 }
 0xf4f   : > { %v3294_v48 = vpack.c.bf16 %v4017_v42, %v4015_v41 }
 0xf50   : > { %v3293_v49 = vpack.c.bf16 %v4018_v47, %v4016_v46 }
 0xf52   : > { %4007 = vmatprep.mubr.msk.bf16.mxu1 %vm635_vm5, %v3293_v49 }
 0xf53   : > { %4008 = vmatmul.mubr.msk.bf16.vlgmr.msra.gmra.mrb[96].mxu1 %vm635_vm5, %v3294_v48 }
 0xf89   : > { %v4003_v50 = vpop.f32.mrb[32].mxu0 }
 0xf8a   : > { %v4019_v28 = vadd.f32 %v4003_v50, %v3547_v39  ;;  %v3270_v14 = vpop.f32.mrb[33].mxu0 }
 0xf8b   : > { %v4004_v34 = vpop.f32.mrb[34].mxu0  ;;  %v4020_v53 = vadd.f32 %v3547_v39, %v3270_v14 }
 0xf8c   : > { %v4021_v51 = vadd.f32 %v4004_v34, %v3547_v39  ;;  %v3273_v52 = vpop.f32.mrb[35].mxu0 }
 0xf8d   : > { %v4022_v54 = vadd.f32 %v3547_v39, %v3273_v52 }
 0xf8e   : > { %v3296_v55 = vpack.c.bf16 %v4021_v51, %v4019_v28 }
 0xf8f   : > { %v3295_v59 = vpack.c.bf16 %v4022_v54, %v4020_v53 }
 0xf91   : > { %4011 = vmatprep.mubr.msk.bf16.mxu1 %vm635_vm5, %v3295_v59 }
 0xf92   : > { %4012 = vmatmul.mubr.msk.bf16.gmra.mrb[100].mxu1 %vm635_vm5, %v3296_v55 }
0x1026   : > { %v4009_v61 = vpop.f32.mrb[96].mxu1 }
0x1027   : > { %v3367_v62 = vadd.f32 %v4009_v61, %v3599_v60  ;;  %v3358_v3 = vpop.f32.mrb[97].mxu1 }
0x1028   : > { %v3359_v0 = vadd.f32 %v3599_v60, %v3358_v3  ;;  %v4010_v1 = vpop.f32.mrb[98].mxu1 }
0x1029   : > { %vm3391_vm10 = vcmp.ge.f32.partialorder %v3367_v62, 0.0  ;;  %v3399_v2 = vmul.f32 0.1, %v3367_v62  ;;  %v3370_v4 = vadd.f32 %v4010_v1, %v3599_v60  ;;  %v3361_v5 = vpop.f32.mrb[99].mxu1 }
0x102a   : > { %vm3389_vm9 = vcmp.ge.f32.partialorder %v3359_v0, 0.0  ;;  %v3397_v6 = vmul.f32 0.1, %v3359_v0  ;;  %v3362_v57 = vadd.f32 %v3599_v60, %v3361_v5 }
0x102b   : > { %v3407_v58 = vsel %vm3391_vm10, %v3367_v62, %v3399_v2  ;;  %vm3392_vm5 = vcmp.ge.f32.partialorder %v3370_v4, 0.0  ;;  %v3400_v7 = vmul.f32 0.1, %v3370_v4 }
0x102c   : > { %3416 = vst.msk [vmem:[%s5032_s25 + $0x10] sm:$0xff] %vm3413_vm8, %v3407_v58  ;;  %v3405_v8 = vsel %vm3389_vm9, %v3359_v0, %v3397_v6  ;;  %vm3390_vm11 = vcmp.ge.f32.partialorder %v3362_v57, 0.0  ;;  %v3398_v9 = vmul.f32 0.1, %v3362_v57 }
0x102d   : > { %3414 = vst.msk [vmem:[%s5032_s25] sm:$0xff] %vm3413_vm8, %v3405_v8  ;;  %v3408_v10 = vsel %vm3392_vm5, %v3370_v4, %v3400_v7 }
0x102e   : > { %3417 = vst.msk [vmem:[%s5032_s25 + $0x18] sm:$0xff] %vm3413_vm8, %v3408_v10  ;;  %v3406_v12 = vsel %vm3390_vm11, %v3362_v57, %v3398_v9 }
0x102f   : > { %3415 = vst.msk [vmem:[%s5032_s25 + $0x8] sm:$0xff] %vm3413_vm8, %v3406_v12 }
0x1065   : > { %v4013_v13 = vpop.f32.mrb[100].mxu1 }
0x1066   : > { %v3383_v15 = vadd.f32 %v4013_v13, %v3599_v60  ;;  %v3374_v56 = vpop.f32.mrb[101].mxu1 }
0x1067   : > { %v3375_v16 = vadd.f32 %v3599_v60, %v3374_v56  ;;  %v4014_v17 = vpop.f32.mrb[102].mxu1 }
0x1068   : > { %vm3395_vm12 = vcmp.ge.f32.partialorder %v3383_v15, 0.0  ;;  %v3403_v18 = vmul.f32 0.1, %v3383_v15  ;;  %v3386_v19 = vadd.f32 %v4014_v17, %v3599_v60  ;;  %v3377_v20 = vpop.f32.mrb[103].mxu1 }
0x1069   : > { %vm3393_vm13 = vcmp.ge.f32.partialorder %v3375_v16, 0.0  ;;  %v3401_v21 = vmul.f32 0.1, %v3375_v16  ;;  %v3378_v22 = vadd.f32 %v3599_v60, %v3377_v20 }
0x106a   : > { %v3411_v24 = vsel %vm3395_vm12, %v3383_v15, %v3403_v18  ;;  %vm3396_vm14 = vcmp.ge.f32.partialorder %v3386_v19, 0.0  ;;  %v3404_v25 = vmul.f32 0.1, %v3386_v19 }
0x106b   : > { %3420 = vst.msk [vmem:[%s5032_s25 + $0x30] sm:$0xff] %vm3413_vm8, %v3411_v24  ;;  %v3409_v26 = vsel %vm3393_vm13, %v3375_v16, %v3401_v21  ;;  %vm3394_vm15 = vcmp.ge.f32.partialorder %v3378_v22, 0.0  ;;  %v3402_v30 = vmul.f32 0.1, %v3378_v22 }
0x106c   : > { %3418 = vst.msk [vmem:[%s5032_s25 + $0x20] sm:$0xff] %vm3413_vm8, %v3409_v26  ;;  %v3412_v31 = vsel %vm3396_vm14, %v3386_v19, %v3404_v25 }
0x106d   : > { %3421 = vst.msk [vmem:[%s5032_s25 + $0x38] sm:$0xff] %vm3413_vm8, %v3412_v31  ;;  %v3410_v27 = vsel %vm3394_vm15, %v3378_v22, %v3402_v30 }
0x106e   : > { %3419 = vst.msk [vmem:[%s5032_s25 + $0x28] sm:$0xff] %vm3413_vm8, %v3410_v27 }
0x106f   : > { %4285 = shalt.err (!%p4282_p2)
}
0x1070   : > { %s4286_s23 = scalar_lea.hbm %s5049_s29, 1024  ;;  %s4290_s14 = scalar_lea.hbm %s5114_s13, 2048 }
0x1071   : > { %p4287_p4 = scmp.ne.s32.totalorder %s5049_s29, %s4286_s23  ;;  %p4291_p9 = scmp.lt.u32.totalorder %s5049_s29, %s5114_s13 }
0x1072   : > { %p4292_p1 = scmp.lt.u32.totalorder %s4290_s14, %s4286_s23  ;;  %p4294_p6 = scmp.lt.u32.totalorder %s4286_s23, %s5049_s29 }
0x1073   : > { %p4288_p5 = pnand %p4287_p4, %p5129_p11 }
0x1074   : > { %p4293_p3 = por %p4292_p1, %p4291_p9 }
0x1075   : > { %p4289_p7 = pneg %p4288_p5 }
0x1076   : > { %p4295_p12 = por %p4294_p6, %p4293_p3 }
0x1078   : > { %p4296_p13 = pnand %p4295_p12, %p4289_p7 }
0x107a   : > { %4299 = shalt.err (!%p4296_p13)
}
0x107b   : > { %s4349_s18 = smov 128   ;;  %s4350_s19 = smov 8  }
0x107c   : > { %4053 = dma.vmem_to_hbm [thread:$0]  (%p5129_p11), %s5051_s27, 1024, %s5049_s29, %s3423_s16, %s4349_s18, %s4349_s18, %s4350_s19  }
0x107d PF: > { %s5130_s24 = sld [smem:[#allocation8_spill]]  ;;  %p5131_p8 = scmp.ne.s32.totalorder %s5127_s21, 0 }
0x107e   : > { %p5132_p10 = scmp.ge.s32.totalorder %s4338_s28, 2 }
0x1080   : > { %p4060_p0 = pnand %p5132_p10, %p5131_p8 }
0x1083   : > { %s3452_s25 = sand.u32 1, %s5130_s24  }
0x1084   : > { %s3453_s23 = scalar_lea.sflag [#allocation4], %s3452_s25 }
0x1085   : > { %4321 = dma.done.wait (!%p4060_p0), %s3453_s23, 1024  }
0x1086   : > { %4323 = vsyncadd (!%p4060_p0), %s3453_s23, 4294966272  ;;  %s5133_s28 = sld [smem:[#allocation10_spill]]  ;;  %s5134_s22 = sld [smem:[#allocation9_spill]] }
0x1087   : > { %s5135_s27 = sld [smem:[#allocation11_spill]]  ;;  %s5136_s25 = smov %s4330_s26 }
0x108c   : > { %p26_p2 = scmp.ge.s32.totalorder %s5133_s28, 4   ;;  %s5137_s26 = smov %s5134_s22 }
0x108e   :  { %28 = sbr.rel (!%p26_p2) target bundleno = 5 (0x5), region = 120 }
0x1095   :  { %3458 = vsyncpa [#allocation3], 1 }
0x1096   :  { %3460 = vsyncpa [#allocation3 + $0x1], 1 }
0x1097   :  { %3461 = vsyncpa [#allocation4], 1 }
0x1098   :  { %3463 = vsyncpa [#allocation4 + $0x1], 1 }

</bundles_post_ra>
